<compile_context>
chip_gen: v5e
topology: v5e:2x2
jax: 0.10.0
libtpu: 0.0.40
codegen_flags: <defaults>
</compile_context>

<pallas_src>
import functools
import math

import jax
import jax.numpy as jnp
from jax.experimental import pallas as pl
from jax.experimental.pallas import tpu as pltpu


def _transformer_block_kernel(
    x_ref,
    wqkv_ref, bqkv_ref,
    wo_ref, bo_ref,
    g1_ref, be1_ref,
    w1_ref, b1_ref, w2_ref, b2_ref,
    g2_ref, be2_ref,
    out_ref,
    *, num_heads,
):
    nb, S, D = x_ref.shape
    T = nb * S
    H = num_heads
    hd = D // H
    scale = 1.0 / (hd ** 0.5)

    x = x_ref[...].astype(jnp.float32).reshape(T, D)   # (T, D) fp32 token block
    xb = x.astype(jnp.bfloat16)

    def linear(a_bf16, w_ref, b_ref):
        # weights are pre-transposed (in, out) bf16; fp32 accumulation on the MXU
        return (jnp.dot(a_bf16, w_ref[...],
                        preferred_element_type=jnp.float32) + b_ref[...])

    def layer_norm(a, g_ref, b_ref, eps=1e-5):
        mu = jnp.mean(a, axis=-1, keepdims=True)
        var = jnp.mean((a - mu) ** 2, axis=-1, keepdims=True)
        return (a - mu) * jax.lax.rsqrt(var + eps) * g_ref[...] + b_ref[...]

    # ---- fused Q/K/V projection: ONE (T, D) @ (D, 3D) matmul ----
    qkv = linear(xb, wqkv_ref, bqkv_ref)                # (T, 3D) fp32
    q = qkv[:, 0 * D:1 * D]
    k = qkv[:, 1 * D:2 * D]
    v = qkv[:, 2 * D:3 * D]

    # ---- head split in registers (no VMEM scratch): (nb*H, S, hd), idx = b*H+h ----
    def to_heads(m):
        return jnp.stack(
            [m[b * S:(b + 1) * S, h * hd:(h + 1) * hd]
             for b in range(nb) for h in range(H)],
            axis=0).astype(jnp.bfloat16)

    qh, kh, vh = to_heads(q), to_heads(k), to_heads(v)  # (nb*H, S, hd) bf16

    # ---- attention core, batched over all (image, head) pairs ----
    s = jnp.einsum('hqd,hkd->hqk', qh, kh,
                   preferred_element_type=jnp.float32) * scale     # (nb*H, S, S)
    s = s - jnp.max(s, axis=-1, keepdims=True)
    p = jnp.exp(s)
    # approx reciprocal runs on the EUP slot; ~1e-3 rel. error on attn weights.
    p = p * pl.reciprocal(jnp.sum(p, axis=-1, keepdims=True), approx=True)
    ctx = jnp.einsum('hqk,hkd->hqd', p.astype(jnp.bfloat16), vh,
                     preferred_element_type=jnp.float32)           # (nb*H, S, hd)

    # ---- merge heads into a lane-dense (T, D) operand, single fc_out matmul ----
    merged = jnp.concatenate(
        [jnp.concatenate([ctx[b * H + h] for h in range(H)], axis=-1)
         for b in range(nb)],
        axis=0).astype(jnp.bfloat16)                    # (T, D) bf16
    attn = linear(merged, wo_ref, bo_ref)               # (T, D) fp32

    # ---- residual + LayerNorm 1 ----
    x1 = layer_norm(attn + x, g1_ref, be1_ref)

    # ---- FeedForward: Linear -> ReLU -> Linear ----
    h1 = jnp.maximum(linear(x1.astype(jnp.bfloat16), w1_ref, b1_ref), 0.0)
    ff = linear(h1.astype(jnp.bfloat16), w2_ref, b2_ref)

    # ---- residual + LayerNorm 2 ----
    out = layer_norm(ff + x1, g2_ref, be2_ref)
    out_ref[...] = out.reshape(nb, S, D).astype(out_ref.dtype)


def _pick_images_per_step(B, S, target_rows=256):
    """Largest divisor nb of B with nb*S <= target_rows (so M fills the MXU)."""
    nb = 1
    for cand in range(1, B + 1):
        if B % cand == 0 and cand * S <= max(target_rows, S):
            nb = cand
    return nb


def transformer_block(x, params, *, num_heads):
    B, S, D = x.shape
    assert D % num_heads == 0, "emb_dim must be divisible by num_heads"
    D_ff = params["w1"].shape[0]
    bf = jnp.bfloat16

    nb = _pick_images_per_step(B, S)
    grid = (B // nb,)

    # One-time host-side weight prep: transpose to (in, out), cast to bf16,
    # and fuse Q/K/V into a single (D, 3D) weight / (1, 3D) bias.
    wqkv = jnp.concatenate(
        [params["wq"].T, params["wk"].T, params["wv"].T], axis=1).astype(bf)
    bqkv = jnp.concatenate(
        [params["bq"], params["bk"], params["bv"]], axis=1).astype(jnp.float32)
    wo_t = params["wo"].T.astype(bf)                     # (D, D)
    w1_t = params["w1"].T.astype(bf)                     # (D, D_ff)
    w2_t = params["w2"].T.astype(bf)                     # (D_ff, D)

    def full_spec(shape):
        nd = len(shape)
        return pl.BlockSpec(shape, lambda i, _nd=nd: (0,) * _nd)

    in_specs = [
        pl.BlockSpec((nb, S, D), lambda i: (i, 0, 0)),   # x block: nb images/step
        full_spec((D, 3 * D)), full_spec((1, 3 * D)),    # fused Wqkv^T, bqkv
        full_spec((D, D)), full_spec((1, D)),            # Wo^T, bo
        full_spec((1, D)), full_spec((1, D)),            # gamma1, beta1
        full_spec((D, D_ff)), full_spec((1, D_ff)),      # W_ff1^T, b_ff1
        full_spec((D_ff, D)), full_spec((1, D)),         # W_ff2^T, b_ff2
        full_spec((1, D)), full_spec((1, D)),            # gamma2, beta2
    ]

    operands = (
        x,
        wqkv, bqkv,
        wo_t, params["bo"],
        params["g1"], params["be1"],
        w1_t, params["b1"], w2_t, params["b2"],
        params["g2"], params["be2"],
    )

    # Realistic VMEM budget: double-buffered operand blocks + headroom for the
    # kernel body's intermediates (instead of claiming a v7x TC's full 64 MiB).
    def nbytes(shape, dtype):
        return math.prod(shape) * jnp.dtype(dtype).itemsize

    block_bytes = (
        nbytes((nb, S, D), x.dtype) + nbytes((nb, S, D), jnp.float32)
        + nbytes(wqkv.shape, bf) + nbytes(bqkv.shape, jnp.float32)
        + nbytes(wo_t.shape, bf) + nbytes(params["bo"].shape, jnp.float32)
        + nbytes(w1_t.shape, bf) + nbytes(params["b1"].shape, jnp.float32)
        + nbytes(w2_t.shape, bf) + nbytes(params["b2"].shape, jnp.float32)
        + 4 * nbytes((1, D), jnp.float32)
    )
    vmem_limit = int(min(100 * 1024 * 1024, 2 * block_bytes + 16 * 1024 * 1024))

    hd = D // num_heads
    flops = (2 * B * S * (3 * D * D + D * D + 2 * D * D_ff)
             + 4 * B * num_heads * S * S * hd)
    transcendentals = B * num_heads * S * S
    bytes_accessed = (2 * B * S * D * 4
                      + (3 * D * D + D * D + 2 * D * D_ff) * 2
                      + (9 * D + D_ff) * 4)

    kernel = functools.partial(_transformer_block_kernel, num_heads=num_heads)

    return pl.pallas_call(
        kernel,
        out_shape=jax.ShapeDtypeStruct((B, S, D), jnp.float32),
        grid_spec=pltpu.PrefetchScalarGridSpec(
            num_scalar_prefetch=0,
            grid=grid,
            in_specs=in_specs,
            out_specs=pl.BlockSpec((nb, S, D), lambda i: (i, 0, 0)),
        ),
        compiler_params=pltpu.CompilerParams(
            dimension_semantics=("parallel",),
            vmem_limit_bytes=vmem_limit,
        ),
        cost_estimate=pl.CostEstimate(
            flops=flops,
            transcendentals=transcendentals,
            bytes_accessed=bytes_accessed,
        ),
    )(*operands)


def _reference(x, p, num_heads):
    B, S, D = x.shape
    hd = D // num_heads

    def lin(a, w, b):
        return a @ w.T + b[0]

    q = lin(x, p["wq"], p["bq"]).reshape(B, S, num_heads, hd)
    k = lin(x, p["wk"], p["bk"]).reshape(B, S, num_heads, hd)
    v = lin(x, p["wv"], p["bv"]).reshape(B, S, num_heads, hd)
    qk = jnp.einsum("bqhd,bkhd->bhqk", q, k) / (hd ** 0.5)
    a = jax.nn.softmax(qk, axis=-1)
    o = jnp.einsum("bhqk,bkhd->bqhd", a, v).reshape(B, S, D)
    o = lin(o, p["wo"], p["bo"])

    def ln(z, g, b, eps=1e-5):
        mu = jnp.mean(z, axis=-1, keepdims=True)
        var = jnp.mean((z - mu) ** 2, axis=-1, keepdims=True)
        return (z - mu) / jnp.sqrt(var + eps) * g[0] + b[0]

    x1 = ln(o + x, p["g1"], p["be1"])
    h1 = jnp.maximum(lin(x1, p["w1"], p["b1"]), 0.0)
    ff = lin(h1, p["w2"], p["b2"])
    return ln(ff + x1, p["g2"], p["be2"])


if __name__ == "__main__":
    # Small but lane-dense config: emb_dim multiple of 128 keeps stores unmasked.
    B, S, D = 2, 16, 128          # batch, n_patches, emb_dim
    num_heads = 4
    forward_expansion = 2
    D_ff = forward_expansion * D

    key = jax.random.PRNGKey(0)
    keys = jax.random.split(key, 16)

    def w(k, shape, scale=0.02):
        return (scale * jax.random.normal(k, shape)).astype(jnp.float32)

    params = {
        "wq": w(keys[0], (D, D)),   "bq": w(keys[1], (1, D)),
        "wk": w(keys[2], (D, D)),   "bk": w(keys[3], (1, D)),
        "wv": w(keys[4], (D, D)),   "bv": w(keys[5], (1, D)),
        "wo": w(keys[6], (D, D)),   "bo": w(keys[7], (1, D)),
        "g1": jnp.ones((1, D), jnp.float32), "be1": jnp.zeros((1, D), jnp.float32),
        "w1": w(keys[8], (D_ff, D)), "b1": w(keys[9], (1, D_ff)),
        "w2": w(keys[10], (D, D_ff)), "b2": w(keys[11], (1, D)),
        "g2": jnp.ones((1, D), jnp.float32), "be2": jnp.zeros((1, D), jnp.float32),
    }

    x = jax.random.normal(keys[12], (B, S, D), dtype=jnp.float32)

    out = transformer_block(x, params, num_heads=num_heads)
    out = jax.block_until_ready(out)

    ref = _reference(x, params, num_heads)
    assert out.shape == (B, S, D)
    # bf16 MXU operands (fp32 accumulation) + approx reciprocal -> loosened tol.
    assert jnp.allclose(out, ref, atol=5e-2, rtol=5e-2), "mismatch vs reference"

    print("KERNEL_OK")
</pallas_src>

<mosaic_0001>
module attributes {stable_mosaic.version = 11 : i64} {
  func.func @_transformer_block_kernel(%arg0: i32, %arg1: memref<2x16x128xf32, #tpu.memory_space<vmem>>, %arg2: memref<128x384xbf16, #tpu.memory_space<vmem>>, %arg3: memref<1x384xf32, #tpu.memory_space<vmem>>, %arg4: memref<128x128xbf16, #tpu.memory_space<vmem>>, %arg5: memref<1x128xf32, #tpu.memory_space<vmem>>, %arg6: memref<1x128xf32, #tpu.memory_space<vmem>>, %arg7: memref<1x128xf32, #tpu.memory_space<vmem>>, %arg8: memref<128x256xbf16, #tpu.memory_space<vmem>>, %arg9: memref<1x256xf32, #tpu.memory_space<vmem>>, %arg10: memref<256x128xbf16, #tpu.memory_space<vmem>>, %arg11: memref<1x128xf32, #tpu.memory_space<vmem>>, %arg12: memref<1x128xf32, #tpu.memory_space<vmem>>, %arg13: memref<1x128xf32, #tpu.memory_space<vmem>>, %arg14: memref<2x16x128xf32, #tpu.memory_space<vmem>>) attributes {dimension_semantics = [#tpu.dimension_semantics<parallel>], iteration_bounds = array<i64: 1>, scalar_prefetch = 0 : i64, scratch_operands = 0 : i64, tpu.core_type = #tpu.core_type<tc>, window_params = [{transform_indices = @transform_0, window_bounds = array<i64: 2, 16, 128>}, {pipeline_mode = #tpu.pipeline_mode<synchronous>, transform_indices = @transform_1, window_bounds = array<i64: 128, 384>}, {pipeline_mode = #tpu.pipeline_mode<synchronous>, transform_indices = @transform_2, window_bounds = array<i64: 1, 384>}, {pipeline_mode = #tpu.pipeline_mode<synchronous>, transform_indices = @transform_3, window_bounds = array<i64: 128, 128>}, {pipeline_mode = #tpu.pipeline_mode<synchronous>, transform_indices = @transform_4, window_bounds = array<i64: 1, 128>}, {pipeline_mode = #tpu.pipeline_mode<synchronous>, transform_indices = @transform_5, window_bounds = array<i64: 1, 128>}, {pipeline_mode = #tpu.pipeline_mode<synchronous>, transform_indices = @transform_6, window_bounds = array<i64: 1, 128>}, {pipeline_mode = #tpu.pipeline_mode<synchronous>, transform_indices = @transform_7, window_bounds = array<i64: 128, 256>}, {pipeline_mode = #tpu.pipeline_mode<synchronous>, transform_indices = @transform_8, window_bounds = array<i64: 1, 256>}, {pipeline_mode = #tpu.pipeline_mode<synchronous>, transform_indices = @transform_9, window_bounds = array<i64: 256, 128>}, {pipeline_mode = #tpu.pipeline_mode<synchronous>, transform_indices = @transform_10, window_bounds = array<i64: 1, 128>}, {pipeline_mode = #tpu.pipeline_mode<synchronous>, transform_indices = @transform_11, window_bounds = array<i64: 1, 128>}, {pipeline_mode = #tpu.pipeline_mode<synchronous>, transform_indices = @transform_12, window_bounds = array<i64: 1, 128>}, {transform_indices = @transform_13, window_bounds = array<i64: 2, 16, 128>}]} {
    %c0 = arith.constant 0 : index
    %c0_0 = arith.constant 0 : index
    %c0_1 = arith.constant 0 : index
    %0 = vector.load %arg1[%c0, %c0_0, %c0_1] : memref<2x16x128xf32, #tpu.memory_space<vmem>>, vector<2x16x128xf32>
    %1 = vector.shape_cast %0 : vector<2x16x128xf32> to vector<32x128xf32>
    %2 = arith.truncf %1 : vector<32x128xf32> to vector<32x128xbf16>
    %c0_2 = arith.constant 0 : index
    %c0_3 = arith.constant 0 : index
    %3 = vector.load %arg2[%c0_2, %c0_3] : memref<128x384xbf16, #tpu.memory_space<vmem>>, vector<128x384xbf16>
    %cst = arith.constant dense<0.000000e+00> : vector<32x384xf32>
    %4 = tpu.matmul %2, %3, %cst {dimension_numbers = #tpu.dot_dimension_numbers<[1], [0], [0], [1], [0, 0, 1, 1], [], []>} : vector<32x128xbf16>, vector<128x384xbf16>, vector<32x384xf32> -> vector<32x384xf32>
    %c0_4 = arith.constant 0 : index
    %c0_5 = arith.constant 0 : index
    %5 = vector.load %arg3[%c0_4, %c0_5] : memref<1x384xf32, #tpu.memory_space<vmem>>, vector<1x384xf32>
    %6 = vector.broadcast %5 : vector<1x384xf32> to vector<32x384xf32>
    %7 = arith.addf %4, %6 : vector<32x384xf32>
    %8 = vector.extract_strided_slice %7 {offsets = [0, 0], sizes = [32, 128], strides = [1, 1]} : vector<32x384xf32> to vector<32x128xf32>
    %9 = vector.extract_strided_slice %7 {offsets = [0, 128], sizes = [32, 128], strides = [1, 1]} : vector<32x384xf32> to vector<32x128xf32>
    %10 = vector.extract_strided_slice %7 {offsets = [0, 256], sizes = [32, 128], strides = [1, 1]} : vector<32x384xf32> to vector<32x128xf32>
    %11 = vector.extract_strided_slice %8 {offsets = [0, 0], sizes = [16, 32], strides = [1, 1]} : vector<32x128xf32> to vector<16x32xf32>
    %12 = vector.extract_strided_slice %8 {offsets = [0, 32], sizes = [16, 32], strides = [1, 1]} : vector<32x128xf32> to vector<16x32xf32>
    %13 = vector.extract_strided_slice %8 {offsets = [0, 64], sizes = [16, 32], strides = [1, 1]} : vector<32x128xf32> to vector<16x32xf32>
    %14 = vector.extract_strided_slice %8 {offsets = [0, 96], sizes = [16, 32], strides = [1, 1]} : vector<32x128xf32> to vector<16x32xf32>
    %15 = vector.extract_strided_slice %8 {offsets = [16, 0], sizes = [16, 32], strides = [1, 1]} : vector<32x128xf32> to vector<16x32xf32>
    %16 = vector.extract_strided_slice %8 {offsets = [16, 32], sizes = [16, 32], strides = [1, 1]} : vector<32x128xf32> to vector<16x32xf32>
    %17 = vector.extract_strided_slice %8 {offsets = [16, 64], sizes = [16, 32], strides = [1, 1]} : vector<32x128xf32> to vector<16x32xf32>
    %18 = vector.extract_strided_slice %8 {offsets = [16, 96], sizes = [16, 32], strides = [1, 1]} : vector<32x128xf32> to vector<16x32xf32>
    %19 = vector.shape_cast %11 : vector<16x32xf32> to vector<1x16x32xf32>
    %20 = vector.shape_cast %12 : vector<16x32xf32> to vector<1x16x32xf32>
    %21 = vector.shape_cast %13 : vector<16x32xf32> to vector<1x16x32xf32>
    %22 = vector.shape_cast %14 : vector<16x32xf32> to vector<1x16x32xf32>
    %23 = vector.shape_cast %15 : vector<16x32xf32> to vector<1x16x32xf32>
    %24 = vector.shape_cast %16 : vector<16x32xf32> to vector<1x16x32xf32>
    %25 = vector.shape_cast %17 : vector<16x32xf32> to vector<1x16x32xf32>
    %26 = vector.shape_cast %18 : vector<16x32xf32> to vector<1x16x32xf32>
    %27 = tpu.concatenate %19, %20, %21, %22, %23, %24, %25, %26 in 0 : vector<1x16x32xf32>, vector<1x16x32xf32>, vector<1x16x32xf32>, vector<1x16x32xf32>, vector<1x16x32xf32>, vector<1x16x32xf32>, vector<1x16x32xf32>, vector<1x16x32xf32> -> vector<8x16x32xf32>
    %28 = arith.truncf %27 : vector<8x16x32xf32> to vector<8x16x32xbf16>
    %29 = vector.extract_strided_slice %9 {offsets = [0, 0], sizes = [16, 32], strides = [1, 1]} : vector<32x128xf32> to vector<16x32xf32>
    %30 = vector.extract_strided_slice %9 {offsets = [0, 32], sizes = [16, 32], strides = [1, 1]} : vector<32x128xf32> to vector<16x32xf32>
    %31 = vector.extract_strided_slice %9 {offsets = [0, 64], sizes = [16, 32], strides = [1, 1]} : vector<32x128xf32> to vector<16x32xf32>
    %32 = vector.extract_strided_slice %9 {offsets = [0, 96], sizes = [16, 32], strides = [1, 1]} : vector<32x128xf32> to vector<16x32xf32>
    %33 = vector.extract_strided_slice %9 {offsets = [16, 0], sizes = [16, 32], strides = [1, 1]} : vector<32x128xf32> to vector<16x32xf32>
    %34 = vector.extract_strided_slice %9 {offsets = [16, 32], sizes = [16, 32], strides = [1, 1]} : vector<32x128xf32> to vector<16x32xf32>
    %35 = vector.extract_strided_slice %9 {offsets = [16, 64], sizes = [16, 32], strides = [1, 1]} : vector<32x128xf32> to vector<16x32xf32>
    %36 = vector.extract_strided_slice %9 {offsets = [16, 96], sizes = [16, 32], strides = [1, 1]} : vector<32x128xf32> to vector<16x32xf32>
    %37 = vector.shape_cast %29 : vector<16x32xf32> to vector<1x16x32xf32>
    %38 = vector.shape_cast %30 : vector<16x32xf32> to vector<1x16x32xf32>
    %39 = vector.shape_cast %31 : vector<16x32xf32> to vector<1x16x32xf32>
    %40 = vector.shape_cast %32 : vector<16x32xf32> to vector<1x16x32xf32>
    %41 = vector.shape_cast %33 : vector<16x32xf32> to vector<1x16x32xf32>
    %42 = vector.shape_cast %34 : vector<16x32xf32> to vector<1x16x32xf32>
    %43 = vector.shape_cast %35 : vector<16x32xf32> to vector<1x16x32xf32>
    %44 = vector.shape_cast %36 : vector<16x32xf32> to vector<1x16x32xf32>
    %45 = tpu.concatenate %37, %38, %39, %40, %41, %42, %43, %44 in 0 : vector<1x16x32xf32>, vector<1x16x32xf32>, vector<1x16x32xf32>, vector<1x16x32xf32>, vector<1x16x32xf32>, vector<1x16x32xf32>, vector<1x16x32xf32>, vector<1x16x32xf32> -> vector<8x16x32xf32>
    %46 = arith.truncf %45 : vector<8x16x32xf32> to vector<8x16x32xbf16>
    %47 = vector.extract_strided_slice %10 {offsets = [0, 0], sizes = [16, 32], strides = [1, 1]} : vector<32x128xf32> to vector<16x32xf32>
    %48 = vector.extract_strided_slice %10 {offsets = [0, 32], sizes = [16, 32], strides = [1, 1]} : vector<32x128xf32> to vector<16x32xf32>
    %49 = vector.extract_strided_slice %10 {offsets = [0, 64], sizes = [16, 32], strides = [1, 1]} : vector<32x128xf32> to vector<16x32xf32>
    %50 = vector.extract_strided_slice %10 {offsets = [0, 96], sizes = [16, 32], strides = [1, 1]} : vector<32x128xf32> to vector<16x32xf32>
    %51 = vector.extract_strided_slice %10 {offsets = [16, 0], sizes = [16, 32], strides = [1, 1]} : vector<32x128xf32> to vector<16x32xf32>
    %52 = vector.extract_strided_slice %10 {offsets = [16, 32], sizes = [16, 32], strides = [1, 1]} : vector<32x128xf32> to vector<16x32xf32>
    %53 = vector.extract_strided_slice %10 {offsets = [16, 64], sizes = [16, 32], strides = [1, 1]} : vector<32x128xf32> to vector<16x32xf32>
    %54 = vector.extract_strided_slice %10 {offsets = [16, 96], sizes = [16, 32], strides = [1, 1]} : vector<32x128xf32> to vector<16x32xf32>
    %55 = vector.shape_cast %47 : vector<16x32xf32> to vector<1x16x32xf32>
    %56 = vector.shape_cast %48 : vector<16x32xf32> to vector<1x16x32xf32>
    %57 = vector.shape_cast %49 : vector<16x32xf32> to vector<1x16x32xf32>
    %58 = vector.shape_cast %50 : vector<16x32xf32> to vector<1x16x32xf32>
    %59 = vector.shape_cast %51 : vector<16x32xf32> to vector<1x16x32xf32>
    %60 = vector.shape_cast %52 : vector<16x32xf32> to vector<1x16x32xf32>
    %61 = vector.shape_cast %53 : vector<16x32xf32> to vector<1x16x32xf32>
    %62 = vector.shape_cast %54 : vector<16x32xf32> to vector<1x16x32xf32>
    %63 = tpu.concatenate %55, %56, %57, %58, %59, %60, %61, %62 in 0 : vector<1x16x32xf32>, vector<1x16x32xf32>, vector<1x16x32xf32>, vector<1x16x32xf32>, vector<1x16x32xf32>, vector<1x16x32xf32>, vector<1x16x32xf32>, vector<1x16x32xf32> -> vector<8x16x32xf32>
    %64 = arith.truncf %63 : vector<8x16x32xf32> to vector<8x16x32xbf16>
    "tpu.trace_start"() <{level = 10 : i32, message = "hqd,hkd->hqk"}> : () -> ()
    %cst_6 = arith.constant dense<0.000000e+00> : vector<8x16x16xf32>
    %65 = tpu.matmul %28, %46, %cst_6 {dimension_numbers = #tpu.dot_dimension_numbers<[2], [2], [1], [1], [0, 0, 0, 1, 1, 1], [0], [0]>} : vector<8x16x32xbf16>, vector<8x16x32xbf16>, vector<8x16x16xf32> -> vector<8x16x16xf32>
    "tpu.trace_stop"() : () -> ()
    %cst_7 = arith.constant 0.176776692 : f32
    %66 = vector.broadcast %cst_7 : f32 to vector<8x16x16xf32>
    %67 = arith.mulf %65, %66 : vector<8x16x16xf32>
    %cst_8 = arith.constant dense<0xFF800000> : vector<8x16xf32>
    %68 = vector.multi_reduction <maximumf>, %67, %cst_8 [2] : vector<8x16x16xf32> to vector<8x16xf32>
    %69 = vector.shape_cast %68 : vector<8x16xf32> to vector<8x16x1xf32>
    %70 = vector.broadcast %69 : vector<8x16x1xf32> to vector<8x16x16xf32>
    %71 = arith.subf %67, %70 : vector<8x16x16xf32>
    %72 = math.exp %71 : vector<8x16x16xf32>
    %cst_9 = arith.constant dense<0.000000e+00> : vector<8x16xf32>
    %73 = vector.multi_reduction <add>, %72, %cst_9 [2] : vector<8x16x16xf32> to vector<8x16xf32>
    %74 = vector.shape_cast %73 : vector<8x16xf32> to vector<8x16x1xf32>
    %75 = tpu.reciprocal %74 {approx = true} : vector<8x16x1xf32> -> vector<8x16x1xf32>
    %76 = vector.broadcast %75 : vector<8x16x1xf32> to vector<8x16x16xf32>
    %77 = arith.mulf %72, %76 : vector<8x16x16xf32>
    %78 = arith.truncf %77 : vector<8x16x16xf32> to vector<8x16x16xbf16>
    "tpu.trace_start"() <{level = 10 : i32, message = "hqk,hkd->hqd"}> : () -> ()
    %cst_10 = arith.constant dense<0.000000e+00> : vector<8x16x32xf32>
    %79 = tpu.matmul %78, %64, %cst_10 {dimension_numbers = #tpu.dot_dimension_numbers<[2], [1], [1], [2], [0, 0, 0, 1, 1, 2], [0], [0]>} : vector<8x16x16xbf16>, vector<8x16x32xbf16>, vector<8x16x32xf32> -> vector<8x16x32xf32>
    "tpu.trace_stop"() : () -> ()
    %80 = vector.extract_strided_slice %79 {offsets = [0, 0, 0], sizes = [1, 16, 32], strides = [1, 1, 1]} : vector<8x16x32xf32> to vector<1x16x32xf32>
    %81 = vector.shape_cast %80 : vector<1x16x32xf32> to vector<16x32xf32>
    %82 = vector.extract_strided_slice %79 {offsets = [1, 0, 0], sizes = [1, 16, 32], strides = [1, 1, 1]} : vector<8x16x32xf32> to vector<1x16x32xf32>
    %83 = vector.shape_cast %82 : vector<1x16x32xf32> to vector<16x32xf32>
    %84 = vector.extract_strided_slice %79 {offsets = [2, 0, 0], sizes = [1, 16, 32], strides = [1, 1, 1]} : vector<8x16x32xf32> to vector<1x16x32xf32>
    %85 = vector.shape_cast %84 : vector<1x16x32xf32> to vector<16x32xf32>
    %86 = vector.extract_strided_slice %79 {offsets = [3, 0, 0], sizes = [1, 16, 32], strides = [1, 1, 1]} : vector<8x16x32xf32> to vector<1x16x32xf32>
    %87 = vector.shape_cast %86 : vector<1x16x32xf32> to vector<16x32xf32>
    %88 = tpu.concatenate %81, %83, %85, %87 in 1 : vector<16x32xf32>, vector<16x32xf32>, vector<16x32xf32>, vector<16x32xf32> -> vector<16x128xf32>
    %89 = vector.extract_strided_slice %79 {offsets = [4, 0, 0], sizes = [1, 16, 32], strides = [1, 1, 1]} : vector<8x16x32xf32> to vector<1x16x32xf32>
    %90 = vector.shape_cast %89 : vector<1x16x32xf32> to vector<16x32xf32>
    %91 = vector.extract_strided_slice %79 {offsets = [5, 0, 0], sizes = [1, 16, 32], strides = [1, 1, 1]} : vector<8x16x32xf32> to vector<1x16x32xf32>
    %92 = vector.shape_cast %91 : vector<1x16x32xf32> to vector<16x32xf32>
    %93 = vector.extract_strided_slice %79 {offsets = [6, 0, 0], sizes = [1, 16, 32], strides = [1, 1, 1]} : vector<8x16x32xf32> to vector<1x16x32xf32>
    %94 = vector.shape_cast %93 : vector<1x16x32xf32> to vector<16x32xf32>
    %95 = vector.extract_strided_slice %79 {offsets = [7, 0, 0], sizes = [1, 16, 32], strides = [1, 1, 1]} : vector<8x16x32xf32> to vector<1x16x32xf32>
    %96 = vector.shape_cast %95 : vector<1x16x32xf32> to vector<16x32xf32>
    %97 = tpu.concatenate %90, %92, %94, %96 in 1 : vector<16x32xf32>, vector<16x32xf32>, vector<16x32xf32>, vector<16x32xf32> -> vector<16x128xf32>
    %98 = tpu.concatenate %88, %97 in 0 : vector<16x128xf32>, vector<16x128xf32> -> vector<32x128xf32>
    %99 = arith.truncf %98 : vector<32x128xf32> to vector<32x128xbf16>
    %c0_11 = arith.constant 0 : index
    %c0_12 = arith.constant 0 : index
    %100 = vector.load %arg4[%c0_11, %c0_12] : memref<128x128xbf16, #tpu.memory_space<vmem>>, vector<128x128xbf16>
    %cst_13 = arith.constant dense<0.000000e+00> : vector<32x128xf32>
    %101 = tpu.matmul %99, %100, %cst_13 {dimension_numbers = #tpu.dot_dimension_numbers<[1], [0], [0], [1], [0, 0, 1, 1], [], []>} : vector<32x128xbf16>, vector<128x128xbf16>, vector<32x128xf32> -> vector<32x128xf32>
    %c0_14 = arith.constant 0 : index
    %c0_15 = arith.constant 0 : index
    %102 = vector.load %arg5[%c0_14, %c0_15] : memref<1x128xf32, #tpu.memory_space<vmem>>, vector<1x128xf32>
    %103 = vector.broadcast %102 : vector<1x128xf32> to vector<32x128xf32>
    %104 = arith.addf %101, %103 : vector<32x128xf32>
    %105 = arith.addf %104, %1 : vector<32x128xf32>
    %cst_16 = arith.constant dense<0.000000e+00> : vector<32xf32>
    %106 = vector.multi_reduction <add>, %105, %cst_16 [1] : vector<32x128xf32> to vector<32xf32>
    %107 = vector.shape_cast %106 : vector<32xf32> to vector<32x1xf32>
    %cst_17 = arith.constant 1.280000e+02 : f32
    %108 = vector.broadcast %cst_17 : f32 to vector<32x1xf32>
    %109 = arith.divf %107, %108 : vector<32x1xf32>
    %110 = vector.broadcast %109 : vector<32x1xf32> to vector<32x128xf32>
    %111 = arith.subf %105, %110 : vector<32x128xf32>
    %112 = arith.mulf %111, %111 : vector<32x128xf32>
    %cst_18 = arith.constant dense<0.000000e+00> : vector<32xf32>
    %113 = vector.multi_reduction <add>, %112, %cst_18 [1] : vector<32x128xf32> to vector<32xf32>
    %114 = vector.shape_cast %113 : vector<32xf32> to vector<32x1xf32>
    %cst_19 = arith.constant 1.280000e+02 : f32
    %115 = vector.broadcast %cst_19 : f32 to vector<32x1xf32>
    %116 = arith.divf %114, %115 : vector<32x1xf32>
    %117 = vector.broadcast %109 : vector<32x1xf32> to vector<32x128xf32>
    %118 = arith.subf %105, %117 : vector<32x128xf32>
    %cst_20 = arith.constant 9.99999974E-6 : f32
    %119 = vector.broadcast %cst_20 : f32 to vector<32x1xf32>
    %120 = arith.addf %116, %119 : vector<32x1xf32>
    %121 = math.rsqrt %120 : vector<32x1xf32>
    %122 = vector.broadcast %121 : vector<32x1xf32> to vector<32x128xf32>
    %123 = arith.mulf %118, %122 : vector<32x128xf32>
    %c0_21 = arith.constant 0 : index
    %c0_22 = arith.constant 0 : index
    %124 = vector.load %arg6[%c0_21, %c0_22] : memref<1x128xf32, #tpu.memory_space<vmem>>, vector<1x128xf32>
    %125 = vector.broadcast %124 : vector<1x128xf32> to vector<32x128xf32>
    %126 = arith.mulf %123, %125 : vector<32x128xf32>
    %c0_23 = arith.constant 0 : index
    %c0_24 = arith.constant 0 : index
    %127 = vector.load %arg7[%c0_23, %c0_24] : memref<1x128xf32, #tpu.memory_space<vmem>>, vector<1x128xf32>
    %128 = vector.broadcast %127 : vector<1x128xf32> to vector<32x128xf32>
    %129 = arith.addf %126, %128 : vector<32x128xf32>
    %130 = arith.truncf %129 : vector<32x128xf32> to vector<32x128xbf16>
    %c0_25 = arith.constant 0 : index
    %c0_26 = arith.constant 0 : index
    %131 = vector.load %arg8[%c0_25, %c0_26] : memref<128x256xbf16, #tpu.memory_space<vmem>>, vector<128x256xbf16>
    %cst_27 = arith.constant dense<0.000000e+00> : vector<32x256xf32>
    %132 = tpu.matmul %130, %131, %cst_27 {dimension_numbers = #tpu.dot_dimension_numbers<[1], [0], [0], [1], [0, 0, 1, 1], [], []>} : vector<32x128xbf16>, vector<128x256xbf16>, vector<32x256xf32> -> vector<32x256xf32>
    %c0_28 = arith.constant 0 : index
    %c0_29 = arith.constant 0 : index
    %133 = vector.load %arg9[%c0_28, %c0_29] : memref<1x256xf32, #tpu.memory_space<vmem>>, vector<1x256xf32>
    %134 = vector.broadcast %133 : vector<1x256xf32> to vector<32x256xf32>
    %135 = arith.addf %132, %134 : vector<32x256xf32>
    %cst_30 = arith.constant 0.000000e+00 : f32
    %136 = vector.broadcast %cst_30 : f32 to vector<32x256xf32>
    %137 = arith.maximumf %135, %136 : vector<32x256xf32>
    %138 = arith.truncf %137 : vector<32x256xf32> to vector<32x256xbf16>
    %c0_31 = arith.constant 0 : index
    %c0_32 = arith.constant 0 : index
    %139 = vector.load %arg10[%c0_31, %c0_32] : memref<256x128xbf16, #tpu.memory_space<vmem>>, vector<256x128xbf16>
    %cst_33 = arith.constant dense<0.000000e+00> : vector<32x128xf32>
    %140 = tpu.matmul %138, %139, %cst_33 {dimension_numbers = #tpu.dot_dimension_numbers<[1], [0], [0], [1], [0, 0, 1, 1], [], []>} : vector<32x256xbf16>, vector<256x128xbf16>, vector<32x128xf32> -> vector<32x128xf32>
    %c0_34 = arith.constant 0 : index
    %c0_35 = arith.constant 0 : index
    %141 = vector.load %arg11[%c0_34, %c0_35] : memref<1x128xf32, #tpu.memory_space<vmem>>, vector<1x128xf32>
    %142 = vector.broadcast %141 : vector<1x128xf32> to vector<32x128xf32>
    %143 = arith.addf %140, %142 : vector<32x128xf32>
    %144 = arith.addf %143, %129 : vector<32x128xf32>
    %cst_36 = arith.constant dense<0.000000e+00> : vector<32xf32>
    %145 = vector.multi_reduction <add>, %144, %cst_36 [1] : vector<32x128xf32> to vector<32xf32>
    %146 = vector.shape_cast %145 : vector<32xf32> to vector<32x1xf32>
    %cst_37 = arith.constant 1.280000e+02 : f32
    %147 = vector.broadcast %cst_37 : f32 to vector<32x1xf32>
    %148 = arith.divf %146, %147 : vector<32x1xf32>
    %149 = vector.broadcast %148 : vector<32x1xf32> to vector<32x128xf32>
    %150 = arith.subf %144, %149 : vector<32x128xf32>
    %151 = arith.mulf %150, %150 : vector<32x128xf32>
    %cst_38 = arith.constant dense<0.000000e+00> : vector<32xf32>
    %152 = vector.multi_reduction <add>, %151, %cst_38 [1] : vector<32x128xf32> to vector<32xf32>
    %153 = vector.shape_cast %152 : vector<32xf32> to vector<32x1xf32>
    %cst_39 = arith.constant 1.280000e+02 : f32
    %154 = vector.broadcast %cst_39 : f32 to vector<32x1xf32>
    %155 = arith.divf %153, %154 : vector<32x1xf32>
    %156 = vector.broadcast %148 : vector<32x1xf32> to vector<32x128xf32>
    %157 = arith.subf %144, %156 : vector<32x128xf32>
    %cst_40 = arith.constant 9.99999974E-6 : f32
    %158 = vector.broadcast %cst_40 : f32 to vector<32x1xf32>
    %159 = arith.addf %155, %158 : vector<32x1xf32>
    %160 = math.rsqrt %159 : vector<32x1xf32>
    %161 = vector.broadcast %160 : vector<32x1xf32> to vector<32x128xf32>
    %162 = arith.mulf %157, %161 : vector<32x128xf32>
    %c0_41 = arith.constant 0 : index
    %c0_42 = arith.constant 0 : index
    %163 = vector.load %arg12[%c0_41, %c0_42] : memref<1x128xf32, #tpu.memory_space<vmem>>, vector<1x128xf32>
    %164 = vector.broadcast %163 : vector<1x128xf32> to vector<32x128xf32>
    %165 = arith.mulf %162, %164 : vector<32x128xf32>
    %c0_43 = arith.constant 0 : index
    %c0_44 = arith.constant 0 : index
    %166 = vector.load %arg13[%c0_43, %c0_44] : memref<1x128xf32, #tpu.memory_space<vmem>>, vector<1x128xf32>
    %167 = vector.broadcast %166 : vector<1x128xf32> to vector<32x128xf32>
    %168 = arith.addf %165, %167 : vector<32x128xf32>
    %169 = vector.shape_cast %168 : vector<32x128xf32> to vector<2x16x128xf32>
    %c0_45 = arith.constant 0 : index
    %c0_46 = arith.constant 0 : index
    %c0_47 = arith.constant 0 : index
    %170 = vector.load %arg14[%c0_45, %c0_46, %c0_47] : memref<2x16x128xf32, #tpu.memory_space<vmem>>, vector<2x16x128xf32>
    tpu.vector_store %arg14[%c0_45, %c0_46, %c0_47], %169 {strides = array<i32>} : memref<2x16x128xf32, #tpu.memory_space<vmem>>, vector<2x16x128xf32>,
    return
  }
  func.func @transform_0(%arg0: i32) -> (i32, i32, i32) {
    %c0_i32 = arith.constant 0 : i32
    %c0_i32_0 = arith.constant 0 : i32
    %c0_i32_1 = arith.constant 0 : i32
    return %arg0, %c0_i32, %c0_i32_0 : i32, i32, i32
  }
  func.func @transform_1(%arg0: i32) -> (i32, i32) {
    %c0_i32 = arith.constant 0 : i32
    %c0_i32_0 = arith.constant 0 : i32
    %c0_i32_1 = arith.constant 0 : i32
    return %c0_i32, %c0_i32_0 : i32, i32
  }
  func.func @transform_2(%arg0: i32) -> (i32, i32) {
    %c0_i32 = arith.constant 0 : i32
    %c0_i32_0 = arith.constant 0 : i32
    %c0_i32_1 = arith.constant 0 : i32
    return %c0_i32, %c0_i32_0 : i32, i32
  }
  func.func @transform_3(%arg0: i32) -> (i32, i32) {
    %c0_i32 = arith.constant 0 : i32
    %c0_i32_0 = arith.constant 0 : i32
    %c0_i32_1 = arith.constant 0 : i32
    return %c0_i32, %c0_i32_0 : i32, i32
  }
  func.func @transform_4(%arg0: i32) -> (i32, i32) {
    %c0_i32 = arith.constant 0 : i32
    %c0_i32_0 = arith.constant 0 : i32
    %c0_i32_1 = arith.constant 0 : i32
    return %c0_i32, %c0_i32_0 : i32, i32
  }
  func.func @transform_5(%arg0: i32) -> (i32, i32) {
    %c0_i32 = arith.constant 0 : i32
    %c0_i32_0 = arith.constant 0 : i32
    %c0_i32_1 = arith.constant 0 : i32
    return %c0_i32, %c0_i32_0 : i32, i32
  }
  func.func @transform_6(%arg0: i32) -> (i32, i32) {
    %c0_i32 = arith.constant 0 : i32
    %c0_i32_0 = arith.constant 0 : i32
    %c0_i32_1 = arith.constant 0 : i32
    return %c0_i32, %c0_i32_0 : i32, i32
  }
  func.func @transform_7(%arg0: i32) -> (i32, i32) {
    %c0_i32 = arith.constant 0 : i32
    %c0_i32_0 = arith.constant 0 : i32
    %c0_i32_1 = arith.constant 0 : i32
    return %c0_i32, %c0_i32_0 : i32, i32
  }
  func.func @transform_8(%arg0: i32) -> (i32, i32) {
    %c0_i32 = arith.constant 0 : i32
    %c0_i32_0 = arith.constant 0 : i32
    %c0_i32_1 = arith.constant 0 : i32
    return %c0_i32, %c0_i32_0 : i32, i32
  }
  func.func @transform_9(%arg0: i32) -> (i32, i32) {
    %c0_i32 = arith.constant 0 : i32
    %c0_i32_0 = arith.constant 0 : i32
    %c0_i32_1 = arith.constant 0 : i32
    return %c0_i32, %c0_i32_0 : i32, i32
  }
  func.func @transform_10(%arg0: i32) -> (i32, i32) {
    %c0_i32 = arith.constant 0 : i32
    %c0_i32_0 = arith.constant 0 : i32
    %c0_i32_1 = arith.constant 0 : i32
    return %c0_i32, %c0_i32_0 : i32, i32
  }
  func.func @transform_11(%arg0: i32) -> (i32, i32) {
    %c0_i32 = arith.constant 0 : i32
    %c0_i32_0 = arith.constant 0 : i32
    %c0_i32_1 = arith.constant 0 : i32
    return %c0_i32, %c0_i32_0 : i32, i32
  }
  func.func @transform_12(%arg0: i32) -> (i32, i32) {
    %c0_i32 = arith.constant 0 : i32
    %c0_i32_0 = arith.constant 0 : i32
    %c0_i32_1 = arith.constant 0 : i32
    return %c0_i32, %c0_i32_0 : i32, i32
  }
  func.func @transform_13(%arg0: i32) -> (i32, i32, i32) {
    %c0_i32 = arith.constant 0 : i32
    %c0_i32_0 = arith.constant 0 : i32
    %c0_i32_1 = arith.constant 0 : i32
    return %arg0, %c0_i32, %c0_i32_0 : i32, i32, i32
  }
}

</mosaic_0001>

<bundles_post_ra>
// kernel: tpu_custom_call.1
= control target key start
LH: loop header
LB: loop body
LE: loop exit
PB: predicated region body
PF: predicated region fallthrough
CT: control target
= control target key end

     0   :  { %18 = vsyncpa [#allocation3], 0  ;;  %s3143_s0 = inlined_call_operand.hbm [shape: f32[2,16,128], index: 0, kind: input, shape index: {}]   ;;  %s3144_s1 = inlined_call_operand.hbm [shape: bf16[128,384], index: 1, kind: input, shape index: {}]   ;;  %s3145_s2 = inlined_call_operand.hbm [shape: f32[1,384], index: 2, kind: input, shape index: {}]   ;;  %s3146_s3 = inlined_call_operand.hbm [shape: bf16[128,128], index: 3, kind: input, shape index: {}]   ;;  %s3147_s4 = inlined_call_operand.vmem [shape: f32[1,128], index: 4, kind: input, shape index: {}]   ;;  %s3148_s5 = inlined_call_operand.vmem [shape: f32[1,128], index: 5, kind: input, shape index: {}]   ;;  %s3149_s6 = inlined_call_operand.vmem [shape: f32[1,128], index: 6, kind: input, shape index: {}]   ;;  %s3150_s7 = inlined_call_operand.hbm [shape: bf16[128,256], index: 7, kind: input, shape index: {}]   ;;  %s3151_s8 = inlined_call_operand.vmem [shape: f32[1,256], index: 8, kind: input, shape index: {}]   ;;  %s3152_s9 = inlined_call_operand.hbm [shape: bf16[256,128], index: 9, kind: input, shape index: {}]   ;;  %s3153_s10 = inlined_call_operand.vmem [shape: f32[1,128], index: 10, kind: input, shape index: {}]   ;;  %s3154_s11 = inlined_call_operand.vmem [shape: f32[1,128], index: 11, kind: input, shape index: {}]   ;;  %s3155_s12 = inlined_call_operand.vmem [shape: f32[1,128], index: 12, kind: input, shape index: {}]   ;;  %s3156_s13 = inlined_call_operand.hbm [shape: f32[2,16,128], index: 13, kind: output, shape index: {}]  }
   0x1   :  { %19 = vsyncpa [#allocation6], 0 }
   0x2   :  { %20 = vsyncpa [#allocation9], 0 }
   0x3   :  { %21 = vsyncpa [#allocation12], 0  ;;  %s40_s27 = sshll.u32 %s3144_s1, 4  ;;  %s41_s27 = int_to_ptr.hbm [resolvable:$true] %s40_s27 }
   0x4   :  { %22 = vsyncpa [#allocation4], 0  ;;  %s2661_s28 = smov [#allocation5]   ;;  %s64_s15 = sshll.u32 %s3146_s3, 4  ;;  %s65_s15 = int_to_ptr.hbm [resolvable:$true] %s64_s15 }
   0x5   :  { %s42_s29 = sshll.u32 %s2661_s28, 4  ;;  %s2662_s16 = smov 192   ;;  %s43_s29 = int_to_ptr.vmem [resolvable:$true] %s42_s29 }
   0x6   :  { %s2663_s17 = smov 12   ;;  %s2664_s18 = smov [#allocation8]  }
   0x7   :  { %48 = dma.hbm_to_vmem [thread:$0]  %s41_s27, 3072, %s43_s29, [#allocation6], %s2662_s16, %s2662_s16, %s2663_s17  }
   0x8   :  { %s66_s19 = sshll.u32 %s2664_s18, 4  ;;  %s2665_s20 = smov 64   ;;  %s67_s19 = int_to_ptr.vmem [resolvable:$true] %s66_s19 }
   0x9   :  { %s2666_s21 = smov 4   ;;  %s27_s23 = sshll.u32 %s3143_s0, 4  ;;  %s28_s23 = int_to_ptr.hbm [resolvable:$true] %s27_s23 }
   0xa   :  { %72 = dma.hbm_to_vmem [thread:$0]  %s65_s15, 1024, %s67_s19, [#allocation9], %s2665_s20, %s2665_s20, %s2666_s21  }
   0xb   :  { %s2667_s24 = smov [#allocation2]   ;;  %s54_s27 = sshll.u32 %s3145_s2, 4  ;;  %s55_s27 = int_to_ptr.hbm [resolvable:$true] %s54_s27 }
   0xc   :  { %s29_s3 = sshll.u32 %s2667_s24, 4  ;;  %s2668_s28 = smov 128   ;;  %s30_s3 = int_to_ptr.vmem [resolvable:$true] %s29_s3 }
   0xd   :  { %s2669_s29 = smov 8   ;;  %s2670_s30 = smov [#allocation7]  }
   0xe   :  { %35 = dma.hbm_to_vmem [thread:$0]  %s28_s23, 512, %s30_s3, [#allocation3], %s2668_s28, %s2668_s28, %s2669_s29  }
   0xf   :  { %s56_s14 = sshll.u32 %s2670_s30, 4  ;;  %s83_s0 = sshll.u32 %s3150_s7, 4  ;;  %s57_s14 = int_to_ptr.vmem [resolvable:$true] %s56_s14  ;;  %s84_s0 = int_to_ptr.hbm [resolvable:$true] %s83_s0 }
  0x10   :  { %59 = dma.hbm_to_vmem [thread:$0]  %s55_s27, 48, %s57_s14, [#allocation6]  }
  0x11   :  { %s98_s2 = sshll.u32 %s3152_s9, 4  ;;  %s2671_s19 = smov [#allocation10]   ;;  %s99_s2 = int_to_ptr.hbm [resolvable:$true] %s98_s2 }
  0x12   :  { %s85_s1 = sshll.u32 %s2671_s19, 4  ;;  %s2672_s22 = smov [#allocation11]   ;;  %s86_s1 = int_to_ptr.vmem [resolvable:$true] %s85_s1 }
  0x13   :  { %91 = dma.hbm_to_vmem [thread:$0]  %s84_s0, 2048, %s86_s1, [#allocation9], %s2668_s28, %s2668_s28, %s2669_s29  }
  0x14   :  { %s100_s23 = sshll.u32 %s2672_s22, 4  ;;  %s101_s23 = int_to_ptr.vmem [resolvable:$true] %s100_s23 }
  0x15   :  { %106 = dma.hbm_to_vmem [thread:$0]  %s99_s2, 2048, %s101_s23, [#allocation12], %s2665_s20, %s2665_s20, %s2666_s21  }
  0x16   :  { %2651 = dma.done.wait [#allocation3], 512  }
  0x17   :  { %2652 = vsyncadd [#allocation3], 4294966784 }
  0x18   :  { %2653 = dma.done.wait [#allocation6], 3120  }
  0x19   :  { %2654 = vsyncadd [#allocation6], 4294964176 }
  0x1a   :  { %2655 = dma.done.wait [#allocation9], 3072  }
  0x1b   :  { %2656 = vsyncadd [#allocation9], 4294964224 }
  0x1c   :  { %2657 = dma.done.wait [#allocation12], 2048  }
  0x1d   :  { %2658 = vsyncadd [#allocation12], 4294965248  ;;  %v2005_v0 = vld [vmem:[#allocation5 + $0xa8] sm:$0xf]  ;;  %v2213_v1 = vld [vmem:[#allocation5 + $0xb0] sm:$0xf0] }
  0x1e   :  { %v2212_v2 = vld [vmem:[#allocation5 + $0xac] sm:$0xf]  ;;  %v2006_v3 = vor.u32 %v2213_v1, %v2005_v0  ;;  %v2007_v4 = vld [vmem:[#allocation5 + $0xb4] sm:$0xf0]  ;;  %v1993_v5 = vld [vmem:[#allocation5 + $0x90] sm:$0xf] }
  0x1f   :  { %v2210_v6 = vld [vmem:[#allocation5 + $0x98] sm:$0xf0]  ;;  %v2010_v7 = vor.u32 %v2212_v2, %v2007_v4  ;;  %v2209_v8 = vld [vmem:[#allocation5 + $0x94] sm:$0xf]  ;;  %v1995_v9 = vld [vmem:[#allocation5 + $0x9c] sm:$0xf0] }
  0x20   :  { %312 = vmatpush.bf16.msra.mxu0 %v2006_v3  ;;  %v1994_v10 = vor.u32 %v2210_v6, %v1993_v5  ;;  %v1998_v11 = vor.u32 %v2209_v8, %v1995_v9  ;;  %v1981_v12 = vld [vmem:[#allocation5 + $0x78] sm:$0xf]  ;;  %v2207_v13 = vld [vmem:[#allocation5 + $0x80] sm:$0xf0]  ;;  %v2206_v14 = vld [vmem:[#allocation5 + $0x7c] sm:$0xf] }
  0x21   :  { %331 = vmatpush.bf16.msra.mxu1 %v2010_v7  ;;  %v1983_v15 = vld [vmem:[#allocation5 + $0x84] sm:$0xf0]  ;;  %v1982_v16 = vor.u32 %v2207_v13, %v1981_v12  ;;  %v1969_v18 = vld [vmem:[#allocation5 + $0x60] sm:$0xf]  ;;  %v2204_v19 = vld [vmem:[#allocation5 + $0x68] sm:$0xf0] }
  0x22   :  { %v1986_v17 = vor.u32 %v2206_v14, %v1983_v15  ;;  %v2203_v20 = vld [vmem:[#allocation5 + $0x64] sm:$0xf]  ;;  %v1971_v21 = vld [vmem:[#allocation5 + $0x6c] sm:$0xf0]  ;;  %v1957_v22 = vld [vmem:[#allocation5 + $0x48] sm:$0xf]  ;;  %v1970_v23 = vor.u32 %v2204_v19, %v1969_v18 }
  0x23   :  { %v2201_v24 = vld [vmem:[#allocation5 + $0x50] sm:$0xf0]  ;;  %v2200_v25 = vld [vmem:[#allocation5 + $0x4c] sm:$0xf]  ;;  %v1959_v26 = vld [vmem:[#allocation5 + $0x54] sm:$0xf0]  ;;  %v1974_v27 = vor.u32 %v2203_v20, %v1971_v21 }
  0x24   :  { %313 = vmatpush.bf16.msra.mxu0 %v1994_v10  ;;  %v1958_v28 = vor.u32 %v2201_v24, %v1957_v22  ;;  %v1962_v29 = vor.u32 %v2200_v25, %v1959_v26  ;;  %v1945_v30 = vld [vmem:[#allocation5 + $0x30] sm:$0xf]  ;;  %v2198_v31 = vld [vmem:[#allocation5 + $0x38] sm:$0xf0]  ;;  %v2197_v32 = vld [vmem:[#allocation5 + $0x34] sm:$0xf] }
  0x25   :  { %332 = vmatpush.bf16.msra.mxu1 %v1998_v11  ;;  %v1947_v33 = vld [vmem:[#allocation5 + $0x3c] sm:$0xf0]  ;;  %v1946_v34 = vor.u32 %v2198_v31, %v1945_v30  ;;  %v2013_v35 = vld [vmem:[#allocation5 + $0xb0] sm:$0xf]  ;;  %v2214_v36 = vld [vmem:[#allocation5 + $0xb8] sm:$0xf0] }
  0x26   :  { %v2001_v37 = vld [vmem:[#allocation5 + $0x98] sm:$0xf]  ;;  %v1950_v38 = vor.u32 %v2197_v32, %v1947_v33  ;;  %v2195_v40 = vld [vmem:[#allocation5 + $0x20] sm:$0xf0]  ;;  %v2014_v41 = vor.u32 %v2214_v36, %v2013_v35  ;;  %v2194_v43 = vld [vmem:[#allocation5 + $0x1c] sm:$0xf] }
  0x27   :  { %v1933_v39 = vld [vmem:[#allocation5 + $0x18] sm:$0xf]  ;;  %v2211_v42 = vld [vmem:[#allocation5 + $0xa0] sm:$0xf0]  ;;  %v1935_v44 = vld [vmem:[#allocation5 + $0x24] sm:$0xf0] }
  0x28   :  { %314 = vmatpush.bf16.msra.mxu0 %v1982_v16  ;;  %350 = vmatpush.bf16.msra.mxu2 %v2014_v41  ;;  %v2002_v45 = vor.u32 %v2211_v42, %v2001_v37  ;;  %v1934_v46 = vor.u32 %v2195_v40, %v1933_v39  ;;  %v1989_v47 = vld [vmem:[#allocation5 + $0x80] sm:$0xf]  ;;  %v2208_v48 = vld [vmem:[#allocation5 + $0x88] sm:$0xf0]  ;;  %v1938_v49 = vor.u32 %v2194_v43, %v1935_v44  ;;  %v2191_v52 = vld [vmem:[#allocation5 + $0x4] sm:$0xf] }
  0x29   :  { %333 = vmatpush.bf16.msra.mxu1 %v1986_v17  ;;  %v1921_v50 = vld [vmem:[#allocation5] sm:$0xf]  ;;  %v2192_v51 = vld [vmem:[#allocation5 + $0x8] sm:$0xf0]  ;;  %v1923_v53 = vld [vmem:[#allocation5 + $0xc] sm:$0xf0]  ;;  %v1990_v55 = vor.u32 %v2208_v48, %v1989_v47 }
  0x2a   :  { %v138_v54 = vld [vmem:[#allocation2] sm:$0xff]  ;;  %v1922_v56 = vor.u32 %v2192_v51, %v1921_v50  ;;  %v139_v57 = vld [vmem:[#allocation2 + $0x8] sm:$0xff]  ;;  %v2205_v59 = vld [vmem:[#allocation5 + $0x70] sm:$0xf0]  ;;  %v1926_v60 = vor.u32 %v2191_v52, %v1923_v53  ;;  %s2673_s7 = smov 32   ;;  %s2674_s9 = smov 96  }
  0x2b   :  { %v1977_v58 = vld [vmem:[#allocation5 + $0x68] sm:$0xf]  ;;  %v142_v61 = vpack.c.bf16 %v139_v57, %v138_v54  ;;  %v1965_v63 = vld [vmem:[#allocation5 + $0x50] sm:$0xf]  ;;  %v2202_v0 = vld [vmem:[#allocation5 + $0x58] sm:$0xf0] }
  0x2c   :  { %315 = vmatpush.bf16.msra.mxu0 %v1970_v23  ;;  %351 = vmatpush.bf16.msra.mxu2 %v2002_v45  ;;  %v1978_v62 = vor.u32 %v2205_v59, %v1977_v58  ;;  %v1966_v1 = vor.u32 %v2202_v0, %v1965_v63  ;;  %v1953_v2 = vld [vmem:[#allocation5 + $0x38] sm:$0xf]  ;;  %v2199_v3 = vld [vmem:[#allocation5 + $0x40] sm:$0xf0]  ;;  %v1941_v5 = vld [vmem:[#allocation5 + $0x20] sm:$0xf] }
  0x2d   :  { %334 = vmatpush.bf16.msra.mxu1 %v1974_v27  ;;  %v1954_v4 = vor.u32 %v2199_v3, %v1953_v2  ;;  %v2196_v6 = vld [vmem:[#allocation5 + $0x28] sm:$0xf0]  ;;  %v1929_v8 = vld [vmem:[#allocation5 + $0x8] sm:$0xf]  ;;  %v2193_v9 = vld [vmem:[#allocation5 + $0x10] sm:$0xf0] }
  0x2e   :  { %v1942_v7 = vor.u32 %v2196_v6, %v1941_v5  ;;  %v140_v10 = vld [vmem:[#allocation2 + $0x10] sm:$0xff]  ;;  %v141_v11 = vld [vmem:[#allocation2 + $0x18] sm:$0xff]  ;;  %v1930_v12 = vor.u32 %v2193_v9, %v1929_v8  ;;  %v2777_v14 = vld [vmem:[#allocation7] sm:$0x7]  ;;  %vm547_vm0 = vcmask 261120   ;;  %vm794_vm1 = vcmask 130048  }
  0x2f   :  { %v143_v13 = vpack.c.bf16 %v141_v11, %v140_v10  ;;  %v179_v17 = vperm.slane %v2777_v14, 1  ;;  %v178_v19 = vperm.slane %v2777_v14, 0  ;;  %vm1237_vm2 = vcmask 523264   ;;  %s1903_s0 = sshll.u32 %s3156_s13, 4  ;;  %s1904_s0 = int_to_ptr.hbm [resolvable:$true] %s1903_s0 }
  0x30   :  { %316 = vmatpush.bf16.msra.mxu0 %v1958_v28  ;;  %352 = vmatpush.bf16.msra.mxu2 %v1990_v55  ;;  %vm1240_vm3 = vcmask 785408  }
  0x31   :  { %335 = vmatpush.bf16.msra.mxu1 %v1962_v29 }
  0x34   :  { %317 = vmatpush.bf16.msra.mxu0 %v1946_v34  ;;  %353 = vmatpush.bf16.msra.mxu2 %v1978_v62 }
  0x35   :  { %336 = vmatpush.bf16.msra.mxu1 %v1950_v38 }
  0x38   :  { %318 = vmatpush.bf16.msra.mxu0 %v1934_v46  ;;  %354 = vmatpush.bf16.msra.mxu2 %v1966_v1 }
  0x39   :  { %337 = vmatpush.bf16.msra.mxu1 %v1938_v49 }
  0x3c   :  { %319 = vmatpush.bf16.msra.mxu0 %v1922_v56  ;;  %355 = vmatpush.bf16.msra.mxu2 %v1954_v4 }
  0x3d   :  { %338 = vmatpush.bf16.msra.mxu1 %v1926_v60  ;;  %v2798_v60 = vperm.slane %v2777_v14, 2 }
  0x3f   :  { %320 = vmatmul.bf16.vlgmr.msra.gmra.mxu0 %v142_v61 }
  0x40   :  { %339 = vmatmul.bf16.vlgmr.msra.gmra.mxu1 %v142_v61  ;;  %356 = vmatpush.bf16.msra.mxu2 %v1942_v7 }
  0x44   :  { %357 = vmatpush.bf16.msra.mxu2 %v1930_v12 }
  0x47   :  { %358 = vmatmul.bf16.vlgmr.msra.gmra.mxu2 %v142_v61 }
  0x4f   :  { %325 = vmatmul.bf16.gmra.mxu0 %v143_v13 }
  0x50   :  { %344 = vmatmul.bf16.gmra.mxu1 %v143_v13 }
  0x57   :  { %363 = vmatmul.bf16.gmra.mxu2 %v143_v13 }
  0xbc   :  { %v321_v15 = vpop.f32.mrf.mxu0 }
  0xbd   :  { %v340_v16 = vpop.f32.mrf.mxu1  ;;  %v322_v24 = vadd.f32 %v321_v15, %v178_v19 }
  0xbe   :  { %v341_v18 = vadd.f32 %v340_v16, %v179_v17 }
  0xbf   :  { %v409_v31 = vpack.c.bf16 %v322_v24, %v322_v24 }
  0xc0   :  { %v465_v23 = vpack.c.bf16 %v341_v18, %v341_v18 }
  0xc1   :  { %v539_v37 = vunpack.c.l.b16 %v409_v31 }
  0xc2   :  { %v544_v28 = vunpack.c.l.b16 %v465_v23 }
  0xc4   :  { %v323_v20 = vpop.f32.mrf.mxu0 }
  0xc5   :  { %v342_v21 = vpop.f32.mrf.mxu1  ;;  %v324_v25 = vadd.f32 %v323_v20, %v178_v19 }
  0xc6   :  { %v343_v22 = vadd.f32 %v342_v21, %v179_v17 }
  0xc7   :  { %v410_v32 = vpack.c.bf16 %v324_v25, %v324_v25  ;;  %v2296_v36 = vpack.i.bf16 %v324_v25, %v322_v24 }
  0xc8   :  { %v2291_v26 = vpack.i.bf16 %v343_v22, %v341_v18  ;;  %v466_v27 = vpack.c.bf16 %v343_v22, %v343_v22 }
  0xc9   :  { %v540_v38 = vunpack.c.l.b16 %v410_v32 }
  0xca   :  { %2292 = vrot.lane.b32.xlu2 %v2291_v26, %s2673_s7  ;;  %2282 = vrot.lane.b32.xlu1 %v2291_v26, %s2665_s20  ;;  %v545_v29 = vunpack.c.l.b16 %v466_v27  ;;  %v359_v59 = vpop.f32.mrf.mxu2 }
  0xcb   :  { %2272 = vrot.lane.b32.xlu0 %v2291_v26, %s2674_s9  ;;  %v541_v40 = vpack.c.b16 %v540_v38, %v539_v37  ;;  %v2801_v61 = vadd.f32 %v359_v59, %v2798_v60 }
  0xcc   :  { %v546_v30 = vpack.c.b16 %v545_v29, %v544_v28  ;;  %v326_v33 = vpop.f32.mrf.mxu0 }
  0xcd   :  { %v345_v34 = vpop.f32.mrf.mxu1  ;;  %v327_v43 = vadd.f32 %v326_v33, %v178_v19 }
  0xce   :  { %v552_v35 = vsel %vm547_vm0, %v546_v30, 0  ;;  %v346_v39 = vadd.f32 %v345_v34, %v179_v17 }
  0xcf   :  { %561 = vmatpush.bf16.xpose.msra.mxu3 %v552_v35  ;;  %v417_v50 = vpack.c.bf16 %v327_v43, %v327_v43 }
  0xd0   :  { %v473_v46 = vpack.c.bf16 %v346_v39, %v346_v39 }
  0xd1   :  { %v660_v55 = vunpack.c.l.b16 %v417_v50 }
  0xd2   :  { %2297 = vrot.lane.b32.xlu2 %v2296_v36, %s2673_s7  ;;  %2287 = vrot.lane.b32.xlu1 %v2296_v36, %s2665_s20  ;;  %v665_v51 = vunpack.c.l.b16 %v473_v46  ;;  %v361_v62 = vpop.f32.mrf.mxu2 }
  0xd3   :  { %2277 = vrot.lane.b32.xlu0 %v2296_v36, %s2674_s9  ;;  %v2804_v63 = vadd.f32 %v361_v62, %v2798_v60 }
  0xd4   :  { %v328_v41 = vpop.f32.mrf.mxu0 }
  0xd5   :  { %v347_v42 = vpop.f32.mrf.mxu1  ;;  %v329_v44 = vadd.f32 %v328_v41, %v178_v19  ;;  %v2808_v0 = vpack.i.bf16 %v2804_v63, %v2801_v61 }
  0xd6   :  { %v348_v45 = vadd.f32 %v347_v42, %v179_v17  ;;  %2015 = vmatmul.msk.bf16.vlgmr.msra.gmra.mxu3 %vm547_vm0, %v541_v40 }
  0xd7   :  { %v2311_v47 = vpack.i.bf16 %v329_v44, %v327_v43  ;;  %v418_v53 = vpack.c.bf16 %v329_v44, %v329_v44 }
  0xd8   :  { %v2306_v48 = vpack.i.bf16 %v348_v45, %v346_v39  ;;  %v474_v49 = vpack.c.bf16 %v348_v45, %v348_v45 }
  0xd9   :  { %v661_v57 = vunpack.c.l.b16 %v418_v53 }
  0xda   :  { %2307 = vrot.lane.b32.xlu1 %v2306_v48, %s2673_s7  ;;  %v666_v52 = vunpack.c.l.b16 %v474_v49  ;;  %2312 = vrot.lane.b32.xlu2 %v2311_v47, %s2665_s20 }
  0xdb   :  { %2302 = vrot.lane.b32.xlu0 %v2306_v48, %s2665_s20  ;;  %v662_v58 = vpack.c.b16 %v661_v57, %v660_v55 }
  0xdc   :  { %v667_v54 = vpack.c.b16 %v666_v52, %v665_v51 }
  0xde   :  { %v672_v56 = vsel %vm547_vm0, %v667_v54, 0 }
  0xdf   :  { %681 = vmatpush.bf16.xpose.msrb.mxu1 %v672_v56 }
  0xe2   :  { %2322 = vrot.lane.b32.xlu1 %v2306_v48, %s2674_s9  ;;  %2327 = vrot.lane.b32.xlu2 %v2311_v47, %s2674_s9 }
  0xe3   :  { %2317 = vrot.lane.b32.xlu0 %v2311_v47, %s2673_s7 }
  0xe6   :  { %2019 = vmatmul.msk.bf16.vlgmr.msrb.gmra.mxu1 %vm547_vm0, %v662_v58 }
  0xea   :  { %2337 = vrot.lane.b32.xlu2 %v2808_v0, %s2673_s7  ;;  %2332 = vrot.lane.b32.xlu1 %v2808_v0, %s2665_s20 }
 0x124   :  { %v2293_v1 = vpop.permute.xlu2 %2292 }
 0x125   :  { %v2295_v3 = vunpack.i.h.bf16 %v2293_v1  ;;  %v2294_v4 = vunpack.i.l.bf16 %v2293_v1 }
 0x127   :  { %v472_v14 = vpack.c.bf16 %v2295_v3, %v2295_v3  ;;  %v471_v15 = vpack.c.bf16 %v2294_v4, %v2294_v4 }
 0x129   :  { %v636_v24 = vunpack.c.l.b16 %v472_v14  ;;  %v635_v25 = vunpack.c.l.b16 %v471_v15 }
 0x12b   :  { %v637_v33 = vpack.c.b16 %v636_v24, %v635_v25 }
 0x12c   :  { %v2812_v20 = vpop.permute.xlu2 %2297 }
 0x12d   :  { %v642_v40 = vsel %vm547_vm0, %v637_v33, 0 }
 0x134   :  { %v2313_v36 = vpop.permute.xlu2 %2312 }
 0x135   :  { %v2315_v45 = vunpack.i.h.bf16 %v2313_v36  ;;  %v2314_v46 = vunpack.i.l.bf16 %v2313_v36 }
 0x137   :  { %v422_v55 = vpack.c.bf16 %v2315_v45, %v2315_v45  ;;  %v421_v56 = vpack.c.bf16 %v2314_v46, %v2314_v46 }
 0x13c   :  { %v2283_v2 = vpop.permute.xlu1 %2282  ;;  %v2328_v1 = vpop.permute.xlu2 %2327 }
 0x13d   :  { %v2285_v5 = vunpack.i.h.bf16 %v2283_v2  ;;  %v2284_v6 = vunpack.i.l.bf16 %v2283_v2  ;;  %v2273_v7 = vpop.permute.xlu0 %2272  ;;  %v2329_v14 = vunpack.i.l.bf16 %v2328_v1 }
 0x13e   :  { %v2275_v8 = vunpack.i.h.bf16 %v2273_v7  ;;  %v2274_v9 = vunpack.i.l.bf16 %v2273_v7  ;;  %v721_v7 = vunpack.c.l.b16 %v422_v55 }
 0x13f   :  { %v470_v10 = vpack.c.bf16 %v2285_v5, %v2285_v5  ;;  %v469_v11 = vpack.c.bf16 %v2284_v6, %v2284_v6  ;;  %v419_v25 = vpack.c.bf16 %v2329_v14, %v2329_v14 }
 0x140   :  { %v468_v12 = vpack.c.bf16 %v2275_v8, %v2275_v8  ;;  %v467_v13 = vpack.c.bf16 %v2274_v9, %v2274_v9  ;;  %v720_v8 = vunpack.c.l.b16 %v421_v56 }
 0x141   :  { %v606_v16 = vunpack.c.l.b16 %v470_v10  ;;  %v605_v17 = vunpack.c.l.b16 %v469_v11 }
 0x142   :  { %v576_v18 = vunpack.c.l.b16 %v468_v12  ;;  %v575_v19 = vunpack.c.l.b16 %v467_v13  ;;  %v2330_v13 = vunpack.i.h.bf16 %v2328_v1 }
 0x143   :  { %v607_v21 = vpack.c.b16 %v606_v16, %v605_v17 }
 0x144   :  { %v2288_v22 = vpop.permute.xlu1 %2287  ;;  %v577_v23 = vpack.c.b16 %v576_v18, %v575_v19  ;;  %v420_v24 = vpack.c.bf16 %v2330_v13, %v2330_v13 }
 0x145   :  { %v2278_v26 = vpop.permute.xlu0 %2277  ;;  %v612_v27 = vsel %vm547_vm0, %v607_v21, 0  ;;  %v2290_v47 = vunpack.i.h.bf16 %v2288_v22  ;;  %v2289_v48 = vunpack.i.l.bf16 %v2288_v22  ;;  %v722_v21 = vpack.c.b16 %v721_v7, %v720_v8 }
 0x146   :  { %v2280_v28 = vunpack.i.h.bf16 %v2278_v26  ;;  %v2279_v29 = vunpack.i.l.bf16 %v2278_v26  ;;  %v582_v30 = vsel %vm547_vm0, %v577_v23, 0  ;;  %v691_v33 = vunpack.c.l.b16 %v420_v24 }
 0x147   :  { %591 = vmatpush.bf16.xpose.msrb.mxu3 %v582_v30  ;;  %v414_v57 = vpack.c.bf16 %v2290_v47, %v2290_v47  ;;  %v413_v58 = vpack.c.bf16 %v2289_v48, %v2289_v48  ;;  %v522_v30 = vpack.c.bf16 %v2804_v63, %v2804_v63 }
 0x148   :  { %v412_v31 = vpack.c.bf16 %v2280_v28, %v2280_v28  ;;  %v411_v32 = vpack.c.bf16 %v2279_v29, %v2279_v29  ;;  %v521_v29 = vpack.c.bf16 %v2801_v61, %v2801_v61 }
 0x149   :  { %v601_v11 = vunpack.c.l.b16 %v414_v57  ;;  %v600_v12 = vunpack.c.l.b16 %v413_v58  ;;  %v995_v36 = vunpack.c.l.b16 %v522_v30 }
 0x14a   :  { %v571_v34 = vunpack.c.l.b16 %v412_v31  ;;  %v570_v35 = vunpack.c.l.b16 %v411_v32  ;;  %v2300_v31 = vunpack.i.h.bf16 %v2812_v20  ;;  %v2299_v32 = vunpack.i.l.bf16 %v2812_v20 }
 0x14b   :  { %v602_v23 = vpack.c.b16 %v601_v11, %v600_v12 }
 0x14c   :  { %v572_v37 = vpack.c.b16 %v571_v34, %v570_v35  ;;  %v2308_v38 = vpop.permute.xlu1 %2307  ;;  %v690_v34 = vunpack.c.l.b16 %v419_v25  ;;  %v994_v35 = vunpack.c.l.b16 %v521_v29  ;;  %v415_v63 = vpack.c.bf16 %v2299_v32, %v2299_v32 }
 0x14d   :  { %v2303_v39 = vpop.permute.xlu0 %2302  ;;  %v2310_v41 = vunpack.i.h.bf16 %v2308_v38  ;;  %v2309_v42 = vunpack.i.l.bf16 %v2308_v38 }
 0x14e   :  { %v2305_v43 = vunpack.i.h.bf16 %v2303_v39  ;;  %v2304_v44 = vunpack.i.l.bf16 %v2303_v39  ;;  %2016 = vmatmul.msk.bf16.vlgmr.msrb.gmra.mxu3 %vm547_vm0, %v572_v37  ;;  %v996_v61 = vpack.c.b16 %v995_v36, %v994_v35 }
 0x14f   :  { %621 = vmatpush.bf16.xpose.msra.mxu3 %v612_v27  ;;  %v480_v51 = vpack.c.bf16 %v2310_v41, %v2310_v41  ;;  %v479_v52 = vpack.c.bf16 %v2309_v42, %v2309_v42  ;;  %v692_v41 = vpack.c.b16 %v691_v33, %v690_v34 }
 0x150   :  { %v478_v49 = vpack.c.bf16 %v2305_v43, %v2305_v43  ;;  %v477_v50 = vpack.c.bf16 %v2304_v44, %v2304_v44  ;;  %1008 = vmatpush.bf16.msrb.mxu0 %v996_v61  ;;  %v630_v44 = vunpack.c.l.b16 %v415_v63 }
 0x151   :  { %v756_v4 = vunpack.c.l.b16 %v480_v51  ;;  %v755_v5 = vunpack.c.l.b16 %v479_v52 }
 0x152   :  { %v726_v53 = vunpack.c.l.b16 %v478_v49  ;;  %v725_v54 = vunpack.c.l.b16 %v477_v50  ;;  %v2338_v50 = vpop.permute.xlu2 %2337 }
 0x153   :  { %v757_v18 = vpack.c.b16 %v756_v4, %v755_v5 }
 0x154   :  { %v2323_v59 = vpop.permute.xlu1 %2322  ;;  %v727_v62 = vpack.c.b16 %v726_v53, %v725_v54  ;;  %v2340_v53 = vunpack.i.h.bf16 %v2338_v50  ;;  %v2339_v54 = vunpack.i.l.bf16 %v2338_v50 }
 0x155   :  { %v2325_v2 = vunpack.i.h.bf16 %v2323_v59  ;;  %v2324_v3 = vunpack.i.l.bf16 %v2323_v59  ;;  %v762_v28 = vsel %vm547_vm0, %v757_v18, 0  ;;  %v2318_v48 = vpop.permute.xlu0 %2317 }
 0x156   :  { %v732_v6 = vsel %vm547_vm0, %v727_v62, 0  ;;  %v2320_v51 = vunpack.i.h.bf16 %v2318_v48  ;;  %v2319_v52 = vunpack.i.l.bf16 %v2318_v48  ;;  %v528_v56 = vpack.c.bf16 %v2340_v53, %v2340_v53 }
 0x157   :  { %651 = vmatpush.bf16.xpose.msrb.mxu3 %v642_v40  ;;  %v476_v9 = vpack.c.bf16 %v2325_v2, %v2325_v2  ;;  %v475_v10 = vpack.c.bf16 %v2324_v3, %v2324_v3  ;;  %741 = vmatpush.bf16.xpose.msrb.mxu2 %v732_v6  ;;  %v416_v40 = vpack.c.bf16 %v2300_v31, %v2300_v31  ;;  %v364_v6 = vpop.f32.mrf.mxu2 }
 0x158   :  { %v527_v57 = vpack.c.bf16 %v2339_v54, %v2339_v54  ;;  %v424_v58 = vpack.c.bf16 %v2320_v51, %v2320_v51  ;;  %v423_v59 = vpack.c.bf16 %v2319_v52, %v2319_v52  ;;  %v1079_v62 = vunpack.c.l.b16 %v528_v56 }
 0x159   :  { %v696_v15 = vunpack.c.l.b16 %v476_v9  ;;  %v695_v16 = vunpack.c.l.b16 %v475_v10  ;;  %v563_v17 = vpop.f32.mrf.mxu3  ;;  %v631_v43 = vunpack.c.l.b16 %v416_v40  ;;  %v2851_v8 = vadd.f32 %v364_v6, %v2798_v60 }
 0x15a   :  { %v2819_v19 = vmul.f32 0.17677669, %v563_v17  ;;  %v1078_v1 = vunpack.c.l.b16 %v527_v57  ;;  %v751_v3 = vunpack.c.l.b16 %v424_v58  ;;  %v750_v4 = vunpack.c.l.b16 %v423_v59 }
 0x15b   :  { %v697_v22 = vpack.c.b16 %v696_v15, %v695_v16  ;;  %v632_v47 = vpack.c.b16 %v631_v43, %v630_v44  ;;  %v529_v11 = vpack.c.bf16 %v2851_v8, %v2851_v8 }
 0x15c   :  { %v795_v26 = vsel %vm794_vm1, %v2819_v19, -inf  ;;  %v1080_v2 = vpack.c.b16 %v1079_v62, %v1078_v1  ;;  %v752_v5 = vpack.c.b16 %v751_v3, %v750_v4  ;;  %v2333_v48 = vpop.permute.xlu1 %2332 }
 0x15d   :  { %796 = vmax.xlane.f32.xlu2 %v795_v26  ;;  %v702_v27 = vsel %vm547_vm0, %v697_v22, 0  ;;  %v1106_v15 = vunpack.c.l.b16 %v529_v11  ;;  %v2335_v50 = vunpack.i.h.bf16 %v2333_v48  ;;  %v2334_v51 = vunpack.i.l.bf16 %v2333_v48 }
 0x15e   :  { %2017 = vmatmul.msk.bf16.vlgmr.msra.gmra.mxu3 %vm547_vm0, %v602_v23  ;;  %2021 = vmatmul.msk.bf16.vlgmr.msrb.gmra.mxu2 %vm547_vm0, %v722_v21 }
 0x15f   :  { %771 = vmatpush.bf16.xpose.msra.mxu3 %v762_v28  ;;  %711 = vmatpush.bf16.xpose.msra.mxu1 %v702_v27  ;;  %v366_v7 = vpop.f32.mrf.mxu2  ;;  %v526_v52 = vpack.c.bf16 %v2335_v50, %v2335_v50  ;;  %v525_v53 = vpack.c.bf16 %v2334_v51, %v2334_v51 }
 0x160   :  { %v2854_v9 = vadd.f32 %v366_v7, %v2798_v60 }
 0x161   :  { %v565_v37 = vpop.f32.mrf.mxu3  ;;  %v1051_v54 = vunpack.c.l.b16 %v526_v52 }
 0x162   :  { %v2835_v38 = vmul.f32 0.17677669, %v565_v37  ;;  %v530_v13 = vpack.c.bf16 %v2854_v9, %v2854_v9 }
 0x163   :  { %v683_v39 = vpop.f32.mrf.mxu1 }
 0x164   :  { %v798_v20 = vsel %vm794_vm1, %v2835_v38, -inf  ;;  %v2840_v42 = vmul.f32 0.17677669, %v683_v39  ;;  %v1107_v16 = vunpack.c.l.b16 %v530_v13 }
 0x165   :  { %799 = vmax.xlane.f32.xlu0 %v798_v20 }
 0x166   :  { %2020 = vmatmul.msk.bf16.vlgmr.msra.gmra.mxu1 %vm547_vm0, %v692_v41  ;;  %v819_v45 = vsel %vm794_vm1, %v2840_v42, -inf  ;;  %v1108_v60 = vpack.c.b16 %v1107_v16, %v1106_v15 }
 0x168   :  { %1120 = vmatpush.bf16.msra.mxu0 %v1108_v60 }
 0x16b   :  { %v685_v46 = vpop.f32.mrf.mxu1 }
 0x16c   :  { %v2845_v49 = vmul.f32 0.17677669, %v685_v46 }
 0x16d   :  { %820 = vmax.xlane.f32.xlu0 %v819_v45 }
 0x16e   :  { %2018 = vmatmul.msk.bf16.vlgmr.msrb.gmra.mxu3 %vm547_vm0, %v632_v47  ;;  %v822_v55 = vsel %vm794_vm1, %v2845_v49, -inf }
 0x16f   :  { %1092 = vmatpush.bf16.msrb.mxu3 %v1080_v2 }
 0x175   :  { %823 = vmax.xlane.f32.xlu0 %v822_v55  ;;  %v1050_v55 = vunpack.c.l.b16 %v525_v53 }
 0x177   :  { %v1052_v56 = vpack.c.b16 %v1051_v54, %v1050_v55 }
 0x179   :  { %1064 = vmatpush.bf16.msra.mxu2 %v1052_v56 }
 0x17e   :  { %2022 = vmatmul.msk.bf16.vlgmr.msra.gmra.mxu3 %vm547_vm0, %v752_v5 }
 0x1d0   :  { %v2922_v13 = vpop.xlane.xlu2 %796 }
 0x1d1   :  { %v593_v10 = vpop.f32.mrf.mxu3 }
 0x1d2   :  { %v2858_v12 = vmul.f32 0.17677669, %v593_v10 }
 0x1d4   :  { %v801_v14 = vsel %vm794_vm1, %v2858_v12, -inf }
 0x1d5   :  { %802 = vmax.xlane.f32.xlu0 %v801_v14 }
 0x1d8   :  { %v2908_v58 = vpop.xlane.xlu0 %799 }
 0x1d9   :  { %v595_v17 = vpop.f32.mrf.mxu3 }
 0x1da   :  { %v2864_v18 = vmul.f32 0.17677669, %v595_v17 }
 0x1dc   :  { %v804_v21 = vsel %vm794_vm1, %v2864_v18, -inf }
 0x1dd   :  { %805 = vmax.xlane.f32.xlu1 %v804_v21 }
 0x1e0   :  { %v2912_v62 = vpop.xlane.xlu0 %820 }
 0x1e1   :  { %v743_v22 = vpop.f32.mrf.mxu2  ;;  %v623_v23 = vpop.f32.mrf.mxu3 }
 0x1e2   :  { %v2868_v24 = vmul.f32 0.17677669, %v743_v22  ;;  %v2876_v30 = vmul.f32 0.17677669, %v623_v23 }
 0x1e3   :  { %v713_v25 = vpop.f32.mrf.mxu1 }
 0x1e4   :  { %v2870_v26 = vmul.f32 0.17677669, %v713_v25  ;;  %v831_v27 = vsel %vm794_vm1, %v2868_v24, -inf  ;;  %v807_v34 = vsel %vm794_vm1, %v2876_v30, -inf }
 0x1e5   :  { %832 = vmax.xlane.f32.xlu2 %v831_v27 }
 0x1e6   :  { %v825_v28 = vsel %vm794_vm1, %v2870_v26, -inf }
 0x1e7   :  { %826 = vmax.xlane.f32.xlu0 %v825_v28 }
 0x1e8   :  { %v2914_v1 = vpop.xlane.xlu0 %823 }
 0x1e9   :  { %v625_v29 = vpop.f32.mrf.mxu3 }
 0x1ea   :  { %v2884_v36 = vmul.f32 0.17677669, %v625_v29 }
 0x1eb   :  { %v715_v31 = vpop.f32.mrf.mxu1 }
 0x1ec   :  { %v2878_v32 = vmul.f32 0.17677669, %v715_v31  ;;  %v810_v39 = vsel %vm794_vm1, %v2884_v36, -inf }
 0x1ee   :  { %v828_v33 = vsel %vm794_vm1, %v2878_v32, -inf }
 0x1ef   :  { %829 = vmax.xlane.f32.xlu1 %v828_v33  ;;  %808 = vmax.xlane.f32.xlu0 %v807_v34 }
 0x1f1   :  { %v653_v35 = vpop.f32.mrf.mxu3 }
 0x1f2   :  { %v2886_v37 = vmul.f32 0.17677669, %v653_v35 }
 0x1f4   :  { %v813_v61 = vsel %vm794_vm1, %v2886_v37, -inf }
 0x1f5   :  { %814 = vmax.xlane.f32.xlu2 %v813_v61 }
 0x1f7   :  { %811 = vmax.xlane.f32.xlu1 %v810_v39 }
 0x1f9   :  { %v655_v40 = vpop.f32.mrf.mxu3 }
 0x1fa   :  { %v2892_v63 = vmul.f32 0.17677669, %v655_v40 }
 0x1fc   :  { %v816_v41 = vsel %vm794_vm1, %v2892_v63, -inf }
 0x1fd   :  { %817 = vmax.xlane.f32.xlu2 %v816_v41 }
 0x201   :  { %v773_v20 = vpop.f32.mrf.mxu3 }
 0x202   :  { %v2896_v43 = vmul.f32 0.17677669, %v773_v20 }
 0x203   :  { %2342 = vrot.lane.b32.xlu0 %v2808_v0, %s2674_s9  ;;  %v745_v0 = vpop.f32.mrf.mxu2 }
 0x204   :  { %v837_v44 = vsel %vm794_vm1, %v2896_v43, -inf  ;;  %v2906_v57 = vmul.f32 0.17677669, %v745_v0 }
 0x205   :  { %838 = vmax.xlane.f32.xlu1 %v837_v44 }
 0x206   :  { %v834_v59 = vsel %vm794_vm1, %v2906_v57, -inf }
 0x209   :  { %v775_v45 = vpop.f32.mrf.mxu3 }
 0x20a   :  { %v2902_v46 = vmul.f32 0.17677669, %v775_v45 }
 0x20c   :  { %v840_v47 = vsel %vm794_vm1, %v2902_v46, -inf }
 0x20d   :  { %841 = vmax.xlane.f32.xlu2 %v840_v47 }
 0x22d   :  { %835 = vmax.xlane.f32.xlu0 %v834_v59 }
 0x248   :  { %v803_v2 = vpop.xlane.xlu0 %802 }
 0x249   :  { %v845_v3 = vsub.f32 %v2858_v12, %v803_v2 }
 0x24b   :  { %v863_v4 = vmul.f32 1.442695, %v845_v3 }
 0x24d   :  { %2397 = vpow2.f32 %v863_v4 }
 0x250   :  { %v806_v5 = vpop.xlane.xlu1 %805 }
 0x251   :  { %v846_v6 = vsub.f32 %v2864_v18, %v806_v5 }
 0x253   :  { %v2918_v7 = vpop.eup %2397  ;;  %v865_v10 = vmul.f32 1.442695, %v846_v6 }
 0x254   :  { %v897_v11 = vsel %vm794_vm1, %v2918_v7, 0.0 }
 0x255   :  { %2399 = vpow2.f32 %v865_v10  ;;  %898 = vadd.xlane.f32.xlu2 %v897_v11 }
 0x258   :  { %v833_v18 = vpop.xlane.xlu2 %832 }
 0x259   :  { %v855_v27 = vsub.f32 %v2868_v24, %v833_v18 }
 0x25a   :  { %v827_v14 = vpop.xlane.xlu0 %826 }
 0x25b   :  { %v2924_v15 = vpop.eup %2399  ;;  %v853_v12 = vsub.f32 %v2870_v26, %v827_v14  ;;  %v883_v31 = vmul.f32 1.442695, %v855_v27  ;;  %v844_v27 = vsub.f32 %v2835_v38, %v2908_v58 }
 0x25c   :  { %v900_v16 = vsel %vm794_vm1, %v2924_v15, 0.0 }
 0x25d   :  { %v879_v17 = vmul.f32 1.442695, %v853_v12  ;;  %901 = vadd.xlane.f32.xlu0 %v900_v16 }
 0x25f   :  { %2401 = vpow2.f32 %v879_v17 }
 0x262   :  { %v830_v60 = vpop.xlane.xlu1 %829  ;;  %v809_v21 = vpop.xlane.xlu0 %808 }
 0x263   :  { %v847_v22 = vsub.f32 %v2876_v30, %v809_v21  ;;  %v854_v30 = vsub.f32 %v2878_v32, %v830_v60 }
 0x265   :  { %v2930_v23 = vpop.eup %2401  ;;  %v867_v25 = vmul.f32 1.442695, %v847_v22  ;;  %v881_v40 = vmul.f32 1.442695, %v854_v30 }
 0x266   :  { %v921_v28 = vsel %vm794_vm1, %v2930_v23, 0.0 }
 0x267   :  { %922 = vadd.xlane.f32.xlu2 %v921_v28  ;;  %2403 = vpow2.f32 %v867_v25  ;;  %v861_v28 = vmul.f32 1.442695, %v844_v27 }
 0x268   :  { %v815_v26 = vpop.xlane.xlu2 %814 }
 0x269   :  { %v849_v29 = vsub.f32 %v2886_v37, %v815_v26 }
 0x26a   :  { %v812_v33 = vpop.xlane.xlu1 %811 }
 0x26b   :  { %v871_v34 = vmul.f32 1.442695, %v849_v29  ;;  %v848_v35 = vsub.f32 %v2884_v36, %v812_v33 }
 0x26d   :  { %2405 = vpow2.f32 %v871_v34  ;;  %v869_v61 = vmul.f32 1.442695, %v848_v35  ;;  %v2938_v39 = vpop.eup %2403 }
 0x26e   :  { %2407 = vpow2.f32 %v883_v31  ;;  %v903_v24 = vsel %vm794_vm1, %v2938_v39, 0.0 }
 0x26f   :  { %2409 = vpow2.f32 %v869_v61  ;;  %904 = vadd.xlane.f32.xlu1 %v903_v24  ;;  %v843_v61 = vsub.f32 %v2819_v19, %v2922_v13 }
 0x270   :  { %v818_v37 = vpop.xlane.xlu2 %817  ;;  %2411 = vpow2.f32 %v881_v40 }
 0x271   :  { %v850_v45 = vsub.f32 %v2892_v63, %v818_v37 }
 0x273   :  { %v2942_v41 = vpop.eup %2405  ;;  %v873_v56 = vmul.f32 1.442695, %v850_v45 }
 0x274   :  { %v2944_v20 = vpop.eup %2407  ;;  %v909_v36 = vsel %vm794_vm1, %v2942_v41, 0.0 }
 0x275   :  { %v2948_v32 = vpop.eup %2409  ;;  %v2343_v44 = vpop.permute.xlu0 %2342  ;;  %910 = vadd.xlane.f32.xlu0 %v909_v36  ;;  %v927_v51 = vsel %vm794_vm1, %v2944_v20, 0.0  ;;  %v859_v36 = vmul.f32 1.442695, %v843_v61 }
 0x276   :  { %v2345_v47 = vunpack.i.h.bf16 %v2343_v44  ;;  %v2344_v48 = vunpack.i.l.bf16 %v2343_v44  ;;  %v906_v50 = vsel %vm794_vm1, %v2948_v32, 0.0  ;;  %v2956_v2 = vpop.eup %2411 }
 0x277   :  { %907 = vadd.xlane.f32.xlu2 %v906_v50  ;;  %928 = vadd.xlane.f32.xlu1 %v927_v51  ;;  %v924_v4 = vsel %vm794_vm1, %v2956_v2, 0.0 }
 0x278   :  { %v524_v52 = vpack.c.bf16 %v2345_v47, %v2345_v47  ;;  %v523_v53 = vpack.c.bf16 %v2344_v48, %v2344_v48  ;;  %v839_v54 = vpop.xlane.xlu1 %838 }
 0x279   :  { %v857_v55 = vsub.f32 %v2896_v43, %v839_v54 }
 0x27a   :  { %v1023_v0 = vunpack.c.l.b16 %v524_v52  ;;  %v1022_v59 = vunpack.c.l.b16 %v523_v53 }
 0x27b   :  { %v887_v63 = vmul.f32 1.442695, %v857_v55 }
 0x27c   :  { %v1024_v3 = vpack.c.b16 %v1023_v0, %v1022_v59 }
 0x27d   :  { %2413 = vpow2.f32 %v887_v63 }
 0x27e   :  { %2415 = vpow2.f32 %v873_v56  ;;  %1036 = vmatpush.bf16.msrb.mxu1 %v1024_v3 }
 0x27f   :  { %925 = vadd.xlane.f32.xlu1 %v924_v4 }
 0x280   :  { %v842_v5 = vpop.xlane.xlu2 %841 }
 0x281   :  { %v858_v6 = vsub.f32 %v2902_v46, %v842_v5  ;;  %v2356_v46 = vpack.i.bf16 %v2854_v9, %v2851_v8  ;;  %v851_v9 = vsub.f32 %v2840_v42, %v2912_v62 }
 0x283   :  { %v2961_v10 = vpop.eup %2413  ;;  %v889_v43 = vmul.f32 1.442695, %v858_v6  ;;  %v875_v26 = vmul.f32 1.442695, %v851_v9 }
 0x284   :  { %v2963_v11 = vpop.eup %2415  ;;  %v933_v14 = vsel %vm794_vm1, %v2961_v10, 0.0 }
 0x285   :  { %934 = vadd.xlane.f32.xlu0 %v933_v14  ;;  %2417 = vpow2.f32 %v889_v43  ;;  %v912_v12 = vsel %vm794_vm1, %v2963_v11, 0.0 }
 0x287   :  { %913 = vadd.xlane.f32.xlu1 %v912_v12 }
 0x28b   :  { %v2969_v16 = vpop.eup %2417 }
 0x28c   :  { %v936_v17 = vsel %vm794_vm1, %v2969_v16, 0.0 }
 0x28f   :  { %937 = vadd.xlane.f32.xlu1 %v936_v17 }
 0x299   :  { %2357 = vrot.lane.b32.xlu0 %v2356_v46, %s2674_s9 }
 0x2a0   :  { %v836_v18 = vpop.xlane.xlu0 %835 }
 0x2a1   :  { %v856_v60 = vsub.f32 %v2906_v57, %v836_v18 }
 0x2a3   :  { %v885_v21 = vmul.f32 1.442695, %v856_v60 }
 0x2a5   :  { %2419 = vpow2.f32 %v885_v21 }
 0x2a6   :  { %2421 = vpow2.f32 %v861_v28 }
 0x2a7   :  { %2423 = vpow2.f32 %v875_v26 }
 0x2a8   :  { %2352 = vrot.lane.b32.xlu1 %v2356_v46, %s2673_s7 }
 0x2ab   :  { %v2978_v22 = vpop.eup %2419 }
 0x2ac   :  { %v930_v25 = vsel %vm794_vm1, %v2978_v22, 0.0  ;;  %v2984_v8 = vpop.eup %2421 }
 0x2ad   :  { %931 = vadd.xlane.f32.xlu2 %v930_v25  ;;  %v894_v57 = vsel %vm794_vm1, %v2984_v8, 0.0  ;;  %v2991_v31 = vpop.eup %2423 }
 0x2ae   :  { %v915_v33 = vsel %vm794_vm1, %v2991_v31, 0.0 }
 0x2c3   :  { %895 = vadd.xlane.f32.xlu0 %v894_v57 }
 0x2c5   :  { %2347 = vrot.lane.b32.xlu2 %v2356_v46, %s2665_s20 }
 0x2c8   :  { %v899_v29 = vpop.xlane.xlu2 %898 }
 0x2c9   :  { %2425 = vrcp.f32 %v899_v29 }
 0x2cf   :  { %v2426_v58 = vpop.eup %2425 }
 0x2d0   :  { %v902_v38 = vpop.xlane.xlu0 %901  ;;  %v957_v42 = vmul.f32 %v2426_v58, %v2918_v7  ;;  %v852_v7 = vsub.f32 %v2845_v49, %v2914_v1 }
 0x2d1   :  { %2427 = vrcp.f32 %v902_v38 }
 0x2d2   :  { %916 = vadd.xlane.f32.xlu1 %v915_v33  ;;  %v973_v34 = vpack.c.bf16 %v957_v42, %v957_v42  ;;  %2429 = vpow2.f32 %v859_v36  ;;  %v877_v47 = vmul.f32 1.442695, %v852_v7 }
 0x2d4   :  { %v1017_v24 = vunpack.c.l.b16 %v973_v34 }
 0x2d7   :  { %v2428_v62 = vpop.eup %2427 }
 0x2d8   :  { %v958_v35 = vmul.f32 %v2428_v62, %v2924_v15  ;;  %v3002_v48 = vpop.eup %2429 }
 0x2d9   :  { %v891_v19 = vsel %vm794_vm1, %v3002_v48, 0.0 }
 0x2da   :  { %v974_v30 = vpack.c.bf16 %v958_v35, %v958_v35  ;;  %v923_v44 = vpop.xlane.xlu2 %922 }
 0x2dc   :  { %v1018_v40 = vunpack.c.l.b16 %v974_v30 }
 0x2de   :  { %v1019_v37 = vpack.c.b16 %v1018_v40, %v1017_v24 }
 0x2e0   :  { %2024 = vmatmul.msk.bf16.vlgmr.msrb.gmra.mxu1 %vm794_vm1, %v1019_v37 }
 0x2e2   :  { %v905_v45 = vpop.xlane.xlu1 %904 }
 0x2e3   :  { %2431 = vrcp.f32 %v905_v45 }
 0x2e8   :  { %v911_v54 = vpop.xlane.xlu0 %910 }
 0x2e9   :  { %v2432_v50 = vpop.eup %2431 }
 0x2ea   :  { %v908_v15 = vpop.xlane.xlu2 %907  ;;  %v3004_v51 = vpop.xlane.xlu1 %928  ;;  %v959_v13 = vmul.f32 %v2432_v50, %v2938_v39 }
 0x2eb   :  { %2433 = vrcp.f32 %v908_v15 }
 0x2ec   :  { %2435 = vpow2.f32 %v877_v47  ;;  %v975_v49 = vpack.c.bf16 %v959_v13, %v959_v13 }
 0x2ed   :  { %2437 = vrcp.f32 %v911_v54 }
 0x2ee   :  { %892 = vadd.xlane.f32.xlu2 %v891_v19  ;;  %v1045_v59 = vunpack.c.l.b16 %v975_v49 }
 0x2f1   :  { %v2434_v52 = vpop.eup %2433 }
 0x2f2   :  { %v3009_v53 = vpop.eup %2435  ;;  %v960_v1 = vmul.f32 %v2434_v52, %v2948_v32  ;;  %v926_v55 = vpop.xlane.xlu1 %925 }
 0x2f3   :  { %v918_v0 = vsel %vm794_vm1, %v3009_v53, 0.0  ;;  %v2438_v4 = vpop.eup %2437 }
 0x2f4   :  { %v976_v56 = vpack.c.bf16 %v960_v1, %v960_v1  ;;  %v961_v5 = vmul.f32 %v2438_v4, %v2942_v41 }
 0x2f6   :  { %v1046_v63 = vunpack.c.l.b16 %v976_v56  ;;  %919 = vadd.xlane.f32.xlu2 %v918_v0  ;;  %v977_v6 = vpack.c.bf16 %v961_v5, %v961_v5 }
 0x2f8   :  { %v1047_v3 = vpack.c.b16 %v1046_v63, %v1045_v59  ;;  %v935_v43 = vpop.xlane.xlu0 %934  ;;  %v1073_v46 = vunpack.c.l.b16 %v977_v6 }
 0x2fa   :  { %2025 = vmatmul.msk.bf16.vlgmr.msra.gmra.mxu2 %vm794_vm1, %v1047_v3  ;;  %v914_v39 = vpop.xlane.xlu1 %913 }
 0x2fb   :  { %2439 = vrcp.f32 %v914_v39 }
 0x2fc   :  { %2441 = vrcp.f32 %v926_v55 }
 0x2fd   :  { %2443 = vrcp.f32 %v923_v44 }
 0x301   :  { %v2440_v32 = vpop.eup %2439 }
 0x302   :  { %v962_v14 = vmul.f32 %v2440_v32, %v2963_v11  ;;  %v2442_v17 = vpop.eup %2441  ;;  %v938_v26 = vpop.xlane.xlu1 %937 }
 0x303   :  { %v2444_v60 = vpop.eup %2443  ;;  %v966_v21 = vmul.f32 %v2442_v17, %v2956_v2  ;;  %2445 = vrcp.f32 %v938_v26 }
 0x304   :  { %v978_v12 = vpack.c.bf16 %v962_v14, %v962_v14  ;;  %v965_v27 = vmul.f32 %v2444_v60, %v2930_v23  ;;  %2447 = vrcp.f32 %v935_v43 }
 0x305   :  { %v982_v57 = vpack.c.bf16 %v966_v21, %v966_v21  ;;  %2449 = vrcp.f32 %v3004_v51 }
 0x306   :  { %v1074_v18 = vunpack.c.l.b16 %v978_v12  ;;  %v981_v11 = vpack.c.bf16 %v965_v27, %v965_v27 }
 0x307   :  { %v1130_v42 = vunpack.c.l.b16 %v982_v57 }
 0x308   :  { %v1075_v25 = vpack.c.b16 %v1074_v18, %v1073_v46  ;;  %v1129_v2 = vunpack.c.l.b16 %v981_v11 }
 0x309   :  { %v2446_v23 = vpop.eup %2445 }
 0x30a   :  { %2026 = vmatmul.msk.bf16.vlgmr.msrb.gmra.mxu3 %vm794_vm1, %v1075_v25  ;;  %v1131_v34 = vpack.c.b16 %v1130_v42, %v1129_v2  ;;  %v2448_v35 = vpop.eup %2447  ;;  %v970_v30 = vmul.f32 %v2446_v23, %v2969_v16 }
 0x30b   :  { %v2358_v41 = vpop.permute.xlu0 %2357  ;;  %v969_v61 = vmul.f32 %v2448_v35, %v2961_v10  ;;  %v2450_v16 = vpop.eup %2449 }
 0x30c   :  { %v2360_v28 = vunpack.i.h.bf16 %v2358_v41  ;;  %v2359_v9 = vunpack.i.l.bf16 %v2358_v41  ;;  %v986_v36 = vpack.c.bf16 %v970_v30, %v970_v30  ;;  %v967_v1 = vmul.f32 %v2450_v16, %v2944_v20  ;;  %v2216_v16 = vld [vmem:[#allocation8 + $0x8] sm:$0xff] }
 0x30d   :  { %v985_v7 = vpack.c.bf16 %v969_v61, %v969_v61 }
 0x30e   :  { %v532_v29 = vpack.c.bf16 %v2360_v28, %v2360_v28  ;;  %v531_v38 = vpack.c.bf16 %v2359_v9, %v2359_v9  ;;  %v1186_v19 = vunpack.c.l.b16 %v986_v36  ;;  %v983_v3 = vpack.c.bf16 %v967_v1, %v967_v1 }
 0x30f   :  { %v1185_v52 = vunpack.c.l.b16 %v985_v7  ;;  %v2221_v7 = vld [vmem:[#allocation8 + $0x30] sm:$0xff] }
 0x310   :  { %v1135_v58 = vunpack.c.l.b16 %v532_v29  ;;  %v1134_v33 = vunpack.c.l.b16 %v531_v38  ;;  %v1157_v6 = vunpack.c.l.b16 %v983_v3 }
 0x311   :  { %v1187_v49 = vpack.c.b16 %v1186_v19, %v1185_v52  ;;  %v2219_v19 = vld [vmem:[#allocation8 + $0x20] sm:$0xff]  ;;  %v2217_v52 = vld [vmem:[#allocation8 + $0x10] sm:$0xff] }
 0x312   :  { %v1136_v62 = vpack.c.b16 %v1135_v58, %v1134_v33 }
 0x314   :  { %1148 = vmatpush.bf16.msra.mxu1 %v1136_v62 }
 0x317   :  { %2028 = vmatmul.msk.bf16.vlgmr.msra.gmra.mxu1 %vm794_vm1, %v1131_v34 }
 0x31a   :  { %v2353_v24 = vpop.permute.xlu1 %2352 }
 0x31b   :  { %v2355_v40 = vunpack.i.h.bf16 %v2353_v24  ;;  %v2354_v37 = vunpack.i.l.bf16 %v2353_v24 }
 0x31d   :  { %v536_v44 = vpack.c.bf16 %v2355_v40, %v2355_v40  ;;  %v535_v45 = vpack.c.bf16 %v2354_v37, %v2354_v37 }
 0x31f   :  { %v1191_v47 = vunpack.c.l.b16 %v536_v44  ;;  %v1190_v15 = vunpack.c.l.b16 %v535_v45  ;;  %v2222_v45 = vld [vmem:[#allocation8 + $0x38] sm:$0xff] }
 0x320   :  { %v932_v50 = vpop.xlane.xlu2 %931 }
 0x321   :  { %2451 = vrcp.f32 %v932_v50  ;;  %v1192_v13 = vpack.c.b16 %v1191_v47, %v1190_v15  ;;  %v2220_v50 = vld [vmem:[#allocation8 + $0x28] sm:$0xff] }
 0x323   :  { %1204 = vmatpush.bf16.msra.mxu3 %v1192_v13  ;;  %v2218_v13 = vld [vmem:[#allocation8 + $0x18] sm:$0xff] }
 0x326   :  { %2030 = vmatmul.msk.bf16.vlgmr.msra.gmra.mxu3 %vm794_vm1, %v1187_v49  ;;  %v2215_v49 = vld [vmem:[#allocation8] sm:$0xff] }
 0x327   :  { %v2452_v10 = vpop.eup %2451 }
 0x328   :  { %v968_v54 = vmul.f32 %v2452_v10, %v2978_v22  ;;  %v2348_v55 = vpop.permute.xlu2 %2347 }
 0x329   :  { %v2350_v51 = vunpack.i.h.bf16 %v2348_v55  ;;  %v2349_v56 = vunpack.i.l.bf16 %v2348_v55 }
 0x32a   :  { %v984_v0 = vpack.c.bf16 %v968_v54, %v968_v54 }
 0x32b   :  { %v534_v59 = vpack.c.bf16 %v2350_v51, %v2350_v51  ;;  %v533_v63 = vpack.c.bf16 %v2349_v56, %v2349_v56 }
 0x32c   :  { %v1158_v5 = vunpack.c.l.b16 %v984_v0 }
 0x32d   :  { %v1163_v39 = vunpack.c.l.b16 %v534_v59  ;;  %v1162_v4 = vunpack.c.l.b16 %v533_v63 }
 0x32e   :  { %v1159_v43 = vpack.c.b16 %v1158_v5, %v1157_v6 }
 0x32f   :  { %v1164_v32 = vpack.c.b16 %v1163_v39, %v1162_v4 }
 0x331   :  { %1176 = vmatpush.bf16.msrb.mxu2 %v1164_v32 }
 0x334   :  { %2029 = vmatmul.msk.bf16.vlgmr.msrb.gmra.mxu2 %vm794_vm1, %v1159_v43 }
 0x336   :  { %v896_v14 = vpop.xlane.xlu0 %895 }
 0x337   :  { %2453 = vrcp.f32 %v896_v14 }
 0x33d   :  { %v2454_v12 = vpop.eup %2453 }
 0x33e   :  { %v956_v17 = vmul.f32 %v2454_v12, %v2984_v8 }
 0x340   :  { %v972_v21 = vpack.c.bf16 %v956_v17, %v956_v17 }
 0x342   :  { %v990_v9 = vunpack.c.l.b16 %v972_v21 }
 0x345   :  { %v917_v25 = vpop.xlane.xlu1 %916 }
 0x35d   :  { %v1038_v20 = vpop.f32.mrf.mxu1 }
 0x361   :  { %v893_v22 = vpop.xlane.xlu2 %892 }
 0x362   :  { %2455 = vrcp.f32 %v893_v22 }
 0x365   :  { %v1040_v46 = vpop.f32.mrf.mxu1 }
 0x366   :  { %v2361_v18 = vpack.i.bf16 %v1040_v46, %v1038_v20 }
 0x368   :  { %v2456_v60 = vpop.eup %2455  ;;  %2362 = vrot.lane.b32.xlu0 %v2361_v18, %s2673_s7 }
 0x369   :  { %v955_v27 = vmul.f32 %v2456_v60, %v3002_v48  ;;  %v920_v41 = vpop.xlane.xlu2 %919 }
 0x36a   :  { %2457 = vrcp.f32 %v920_v41 }
 0x36b   :  { %v971_v28 = vpack.c.bf16 %v955_v27, %v955_v27  ;;  %2459 = vrcp.f32 %v917_v25 }
 0x36d   :  { %v989_v57 = vunpack.c.l.b16 %v971_v28 }
 0x36f   :  { %v991_v26 = vpack.c.b16 %v990_v9, %v989_v57 }
 0x370   :  { %v2458_v29 = vpop.eup %2457 }
 0x371   :  { %2023 = vmatmul.msk.bf16.vlgmr.msrb.gmra.mxu0 %vm794_vm1, %v991_v26  ;;  %v2460_v8 = vpop.eup %2459  ;;  %v964_v38 = vmul.f32 %v2458_v29, %v3009_v53 }
 0x372   :  { %v963_v11 = vmul.f32 %v2460_v8, %v2991_v31  ;;  %1343 = vmatpush.bf16.msrb.mxu0 %v2222_v45 }
 0x373   :  { %v980_v58 = vpack.c.bf16 %v964_v38, %v964_v38 }
 0x374   :  { %v979_v33 = vpack.c.bf16 %v963_v11, %v963_v11 }
 0x375   :  { %v1102_v42 = vunpack.c.l.b16 %v980_v58  ;;  %v2391_v58 = vld [vmem:[%s3147_s4] ss:$0 sm:$0xff] }
 0x376   :  { %v1101_v62 = vunpack.c.l.b16 %v979_v33  ;;  %1344 = vmatpush.bf16.msrb.mxu0 %v2221_v7 }
 0x378   :  { %v1103_v2 = vpack.c.b16 %v1102_v42, %v1101_v62  ;;  %v2479_v62 = vld [vmem:[#allocation2] sm:$0xff] }
 0x37a   :  { %1345 = vmatpush.bf16.msrb.mxu0 %v2220_v50 }
 0x37d   :  { %v1066_v48 = vpop.f32.mrf.mxu2 }
 0x37e   :  { %1346 = vmatpush.bf16.msrb.mxu0 %v2219_v19 }
 0x381   :  { %2027 = vmatmul.msk.bf16.vlgmr.msra.gmra.mxu0 %vm794_vm1, %v1103_v2 }
 0x382   :  { %1347 = vmatpush.bf16.msrb.mxu0 %v2218_v13 }
 0x385   :  { %v1068_v34 = vpop.f32.mrf.mxu2 }
 0x386   :  { %v2366_v23 = vpack.i.bf16 %v1068_v34, %v1066_v48  ;;  %1348 = vmatpush.bf16.msrb.mxu0 %v2217_v52 }
 0x388   :  { %2367 = vrot.lane.b32.xlu1 %v2366_v23, %s2665_s20  ;;  %v2480_v23 = vld [vmem:[#allocation2 + $0x8] sm:$0xff] }
 0x38a   :  { %1349 = vmatpush.bf16.msrb.mxu0 %v2216_v16 }
 0x38d   :  { %v1094_v35 = vpop.f32.mrf.mxu3 }
 0x38e   :  { %1350 = vmatpush.bf16.msrb.mxu0 %v2215_v49 }
 0x394   :  { %v1150_v30 = vpop.f32.mrf.mxu1 }
 0x395   :  { %v1096_v61 = vpop.f32.mrf.mxu3 }
 0x396   :  { %v2371_v24 = vpack.i.bf16 %v1096_v61, %v1094_v35 }
 0x398   :  { %2372 = vrot.lane.b32.xlu2 %v2371_v24, %s2674_s9  ;;  %v2481_v24 = vld [vmem:[#allocation2 + $0x10] sm:$0xff] }
 0x39c   :  { %v1152_v53 = vpop.f32.mrf.mxu1 }
 0x39d   :  { %v2376_v31 = vpack.i.bf16 %v1152_v53, %v1150_v30 }
 0x39f   :  { %2377 = vrot.lane.b32.xlu0 %v2376_v31, %s2673_s7 }
 0x3a9   :  { %v1206_v40 = vpop.f32.mrf.mxu3 }
 0x3b1   :  { %v1208_v37 = vpop.f32.mrf.mxu3 }
 0x3b2   :  { %v2386_v36 = vpack.i.bf16 %v1208_v37, %v1206_v40  ;;  %v2482_v37 = vld [vmem:[#allocation2 + $0x18] sm:$0xff] }
 0x3b4   :  { %2387 = vrot.lane.b32.xlu0 %v2386_v36, %s2674_s9 }
 0x3b7   :  { %v1178_v44 = vpop.f32.mrf.mxu2 }
 0x3bf   :  { %v1180_v47 = vpop.f32.mrf.mxu2 }
 0x3c0   :  { %v2381_v15 = vpack.i.bf16 %v1180_v47, %v1178_v44  ;;  %v2675_v44 = vmov 128.0  }
 0x3c1   :  { %2461 = vrcp.f32 %v2675_v44  ;;  %v2065_v44 = vld [vmem:[#allocation10] sm:$0xf] }
 0x3c2   :  { %2382 = vrot.lane.b32.xlu1 %v2381_v15, %s2665_s20 }
 0x3c7   :  { %v2462_v45 = vpop.eup %2461 }
 0x3c8   :  { %v1375_v7 = vmul.f32 128.0, %v2462_v45  ;;  %vm1379_vm4 = vweird.f32 %v2462_v45 }
 0x3ca   :  { %v1376_v47 = vsub.f32 1.0, %v1375_v7 }
 0x3cc   :  { %v1377_v15 = vmul.f32 %v2462_v45, %v1376_v47 }
 0x3ce   :  { %v1378_v50 = vadd.f32 %v2462_v45, %v1377_v15  ;;  %v2223_v15 = vld [vmem:[#allocation10 + $0x4] sm:$0xf] }
 0x3d0   :  { %v3055_v19 = vsel %vm1379_vm4, %v2462_v45, %v1378_v50  ;;  %v2224_v45 = vld [vmem:[#allocation10 + $0x4] sm:$0xf0]  ;;  %v2067_v50 = vld [vmem:[#allocation10 + $0x8] sm:$0xf0] }
 0x3da   :  { %v2363_v1 = vpop.permute.xlu0 %2362 }
 0x3db   :  { %v2365_v51 = vunpack.i.h.bf16 %v2363_v1  ;;  %v2364_v56 = vunpack.i.l.bf16 %v2363_v1 }
 0x3ee   :  { %v1010_v10 = vpop.f32.mrf.mxu0 }
 0x3ef   :  { %v1235_v3 = vsel %vm547_vm0, %v1010_v10, %v2364_v56 }
 0x3f2   :  { %v2373_v54 = vpop.permute.xlu2 %2372 }
 0x3f3   :  { %v2375_v39 = vunpack.i.h.bf16 %v2373_v54  ;;  %v2374_v4 = vunpack.i.l.bf16 %v2373_v54 }
 0x3f6   :  { %v1012_v55 = vpop.f32.mrf.mxu0 }
 0x3f7   :  { %v1236_v5 = vsel %vm547_vm0, %v1012_v55, %v2365_v51 }
 0x3fa   :  { %v2368_v0 = vpop.permute.xlu1 %2367 }
 0x3fb   :  { %v2370_v59 = vunpack.i.h.bf16 %v2368_v0  ;;  %v2369_v63 = vunpack.i.l.bf16 %v2368_v0 }
 0x3fd   :  { %v1238_v32 = vsel %vm1237_vm2, %v1235_v3, %v2369_v63  ;;  %v1239_v6 = vsel %vm1237_vm2, %v1236_v5, %v2370_v59  ;;  %v2121_v5 = vld [vmem:[#allocation10 + $0x70] sm:$0xf] }
 0x3fe   :  { %v1241_v43 = vsel %vm1240_vm3, %v1238_v32, %v2374_v4  ;;  %v1242_v14 = vsel %vm1240_vm3, %v1239_v6, %v2375_v39  ;;  %v1122_v22 = vpop.f32.mrf.mxu0  ;;  %v2238_v32 = vld [vmem:[#allocation10 + $0x74] sm:$0xf0]  ;;  %v2237_v6 = vld [vmem:[#allocation10 + $0x74] sm:$0xf] }
 0x3ff   :  { %v1273_v20 = vpack.c.bf16 %v1242_v14, %v1241_v43  ;;  %v2122_v43 = vor.u32 %v2238_v32, %v2121_v5  ;;  %v2123_v14 = vld [vmem:[#allocation10 + $0x78] sm:$0xf0] }
 0x401   :  { %1351 = vmatmul.bf16.vlgmr.msrb.gmra.mxu0 %v1273_v20  ;;  %v2126_v20 = vor.u32 %v2237_v6, %v2123_v14  ;;  %1573 = vmatpush.bf16.msrb.mxu1 %v2122_v43 }
 0x403   :  { %1592 = vmatpush.bf16.msra.mxu2 %v2126_v20 }
 0x406   :  { %v1124_v21 = vpop.f32.mrf.mxu0 }
 0x411   :  { %v2378_v12 = vpop.permute.xlu0 %2377 }
 0x412   :  { %v2380_v17 = vunpack.i.h.bf16 %v2378_v12  ;;  %v2379_v46 = vunpack.i.l.bf16 %v2378_v12  ;;  %v2236_v12 = vld [vmem:[#allocation10 + $0x64] sm:$0xf0] }
 0x414   :  { %v1267_v41 = vsel %vm547_vm0, %v1122_v22, %v2379_v46  ;;  %v1268_v28 = vsel %vm547_vm0, %v1124_v21, %v2380_v17  ;;  %v2113_v22 = vld [vmem:[#allocation10 + $0x60] sm:$0xf]  ;;  %v2235_v17 = vld [vmem:[#allocation10 + $0x64] sm:$0xf]  ;;  %v2105_v21 = vld [vmem:[#allocation10 + $0x50] sm:$0xf] }
 0x415   :  { %v2114_v46 = vor.u32 %v2236_v12, %v2113_v22 }
 0x417   :  { %1574 = vmatpush.bf16.msrb.mxu1 %v2114_v46 }
 0x426   :  { %v2388_v18 = vpop.permute.xlu0 %2387 }
 0x427   :  { %v2390_v9 = vunpack.i.h.bf16 %v2388_v18  ;;  %v2389_v57 = vunpack.i.l.bf16 %v2388_v18  ;;  %v2115_v18 = vld [vmem:[#allocation10 + $0x68] sm:$0xf0] }
 0x434   :  { %v2383_v60 = vpop.permute.xlu1 %2382 }
 0x435   :  { %v2385_v25 = vunpack.i.h.bf16 %v2383_v60  ;;  %v2384_v27 = vunpack.i.l.bf16 %v2383_v60  ;;  %v2118_v60 = vor.u32 %v2235_v17, %v2115_v18  ;;  %v2392_v17 = vld [vmem:[%s3148_s5] ss:$0 sm:$0xff] }
 0x437   :  { %v1269_v26 = vsel %vm1237_vm2, %v1267_v41, %v2384_v27  ;;  %v1270_v29 = vsel %vm1237_vm2, %v1268_v28, %v2385_v25  ;;  %1593 = vmatpush.bf16.msra.mxu2 %v2118_v60  ;;  %v2234_v25 = vld [vmem:[#allocation10 + $0x54] sm:$0xf0]  ;;  %v2233_v27 = vld [vmem:[#allocation10 + $0x54] sm:$0xf]  ;;  %v2107_v28 = vld [vmem:[#allocation10 + $0x58] sm:$0xf0] }
 0x438   :  { %v1271_v8 = vsel %vm1240_vm3, %v1269_v26, %v2389_v57  ;;  %v1272_v38 = vsel %vm1240_vm3, %v1270_v29, %v2390_v9  ;;  %v2106_v41 = vor.u32 %v2234_v25, %v2105_v21  ;;  %v2110_v9 = vor.u32 %v2233_v27, %v2107_v28  ;;  %v2097_v57 = vld [vmem:[#allocation10 + $0x40] sm:$0xf]  ;;  %v2232_v26 = vld [vmem:[#allocation10 + $0x44] sm:$0xf0]  ;;  %v2231_v29 = vld [vmem:[#allocation10 + $0x44] sm:$0xf] }
 0x439   :  { %v1274_v11 = vpack.c.bf16 %v1272_v38, %v1271_v8  ;;  %v2098_v8 = vor.u32 %v2232_v26, %v2097_v57  ;;  %v2099_v38 = vld [vmem:[#allocation10 + $0x48] sm:$0xf0]  ;;  %v2393_v25 = vld [vmem:[%s3149_s6] ss:$0 sm:$0xff] }
 0x43a   :  { %1575 = vmatpush.bf16.msrb.mxu1 %v2106_v41 }
 0x43b   :  { %1356 = vmatmul.bf16.gmra.mxu0 %v1274_v11  ;;  %1594 = vmatpush.bf16.msra.mxu2 %v2110_v9  ;;  %v2102_v11 = vor.u32 %v2231_v29, %v2099_v38  ;;  %v2254_v29 = vld [vmem:[#allocation11 + $0x78] sm:$0xff] }
 0x43c   :  { %1774 = vmatpush.bf16.msra.mxu0 %v2254_v29 }
 0x43e   :  { %1576 = vmatpush.bf16.msrb.mxu1 %v2098_v8 }
 0x43f   :  { %1595 = vmatpush.bf16.msra.mxu2 %v2102_v11  ;;  %v2245_v11 = vld [vmem:[#allocation11 + $0x30] sm:$0xff] }
 0x47e   :  { %v1352_v33 = vpop.f32.mrf.mxu0 }
 0x47f   :  { %v1353_v42 = vadd.f32 %v2391_v58, %v1352_v33  ;;  %v2230_v33 = vld [vmem:[#allocation10 + $0x34] sm:$0xf0] }
 0x481   :  { %v1362_v48 = vadd.f32 %v2479_v62, %v1353_v42  ;;  %v2229_v42 = vld [vmem:[#allocation10 + $0x34] sm:$0xf] }
 0x483   :  { %1366 = vadd.xlane.f32.xlu2 %v1362_v48 }
 0x486   :  { %v1354_v2 = vpop.f32.mrf.mxu0 }
 0x487   :  { %v1355_v34 = vadd.f32 %v2391_v58, %v1354_v2 }
 0x489   :  { %v1363_v35 = vadd.f32 %v2480_v23, %v1355_v34  ;;  %v2081_v34 = vld [vmem:[#allocation10 + $0x20] sm:$0xf]  ;;  %v2228_v23 = vld [vmem:[#allocation10 + $0x24] sm:$0xf0] }
 0x48b   :  { %1368 = vadd.xlane.f32.xlu1 %v1363_v35 }
 0x4b8   :  { %v1357_v30 = vpop.f32.mrf.mxu0 }
 0x4b9   :  { %v1358_v61 = vadd.f32 %v2391_v58, %v1357_v30  ;;  %v2082_v30 = vor.u32 %v2228_v23, %v2081_v34 }
 0x4bb   :  { %v1364_v53 = vadd.f32 %v2481_v24, %v1358_v61  ;;  %v2083_v61 = vld [vmem:[#allocation10 + $0x28] sm:$0xf0] }
 0x4bd   :  { %1370 = vadd.xlane.f32.xlu0 %v1364_v53 }
 0x4c0   :  { %v1359_v31 = vpop.f32.mrf.mxu0 }
 0x4c1   :  { %v1360_v40 = vadd.f32 %v2391_v58, %v1359_v31  ;;  %v2089_v58 = vld [vmem:[#allocation10 + $0x30] sm:$0xf]  ;;  %v2226_v31 = vld [vmem:[#allocation10 + $0x14] sm:$0xf0] }
 0x4c2   :  { %v2090_v62 = vor.u32 %v2230_v33, %v2089_v58  ;;  %v2253_v58 = vld [vmem:[#allocation11 + $0x70] sm:$0xff] }
 0x4c3   :  { %v1365_v36 = vadd.f32 %v2482_v37, %v1360_v40  ;;  %v2225_v40 = vld [vmem:[#allocation10 + $0x14] sm:$0xf]  ;;  %1775 = vmatpush.bf16.msra.mxu0 %v2253_v58 }
 0x4c4   :  { %1577 = vmatpush.bf16.msrb.mxu1 %v2090_v62 }
 0x4c5   :  { %1372 = vadd.xlane.f32.xlu2 %v1365_v36 }
 0x4c8   :  { %1578 = vmatpush.bf16.msrb.mxu1 %v2082_v30 }
 0x4f6   :  { %v1367_v13 = vpop.xlane.xlu2 %1366 }
 0x4f7   :  { %v1381_v52 = vmul.f32 %v3055_v19, %v1367_v13 }
 0x4f9   :  { %v3058_v16 = vsub.f32 %v1362_v48, %v1381_v52  ;;  %v2091_v48 = vld [vmem:[#allocation10 + $0x38] sm:$0xf0]  ;;  %v2066_v52 = vor.u32 %v2224_v45, %v2065_v44 }
 0x4fa   :  { %v2094_v2 = vor.u32 %v2229_v42, %v2091_v48  ;;  %v2244_v48 = vld [vmem:[#allocation11 + $0x28] sm:$0xff] }
 0x4fb   :  { %v1389_v49 = vmul.f32 %v3058_v16, %v3058_v16 }
 0x4fc   :  { %1596 = vmatpush.bf16.msra.mxu2 %v2094_v2  ;;  %v2252_v2 = vld [vmem:[#allocation11 + $0x68] sm:$0xff] }
 0x4fd   :  { %1393 = vadd.xlane.f32.xlu1 %v1389_v49  ;;  %v2070_v49 = vor.u32 %v2223_v15, %v2067_v50  ;;  %1776 = vmatpush.bf16.msra.mxu0 %v2252_v2  ;;  %v2394_v2 = vld [vmem:[%s3153_s10] ss:$0 sm:$0xff] }
 0x4fe   :  { %v1369_v10 = vpop.xlane.xlu1 %1368 }
 0x4ff   :  { %v1382_v1 = vmul.f32 %v3055_v19, %v1369_v10 }
 0x501   :  { %v3063_v54 = vsub.f32 %v1363_v35, %v1382_v1  ;;  %v2227_v35 = vld [vmem:[#allocation10 + $0x24] sm:$0xf] }
 0x502   :  { %v2086_v24 = vor.u32 %v2227_v35, %v2083_v61  ;;  %v2243_v35 = vld [vmem:[#allocation11 + $0x20] sm:$0xff] }
 0x503   :  { %v1390_v55 = vmul.f32 %v3063_v54, %v3063_v54 }
 0x504   :  { %1597 = vmatpush.bf16.msra.mxu2 %v2086_v24 }
 0x505   :  { %1395 = vadd.xlane.f32.xlu0 %v1390_v55 }
 0x530   :  { %v1371_v51 = vpop.xlane.xlu0 %1370 }
 0x531   :  { %v1383_v56 = vmul.f32 %v3055_v19, %v1371_v51 }
 0x533   :  { %v3068_v0 = vsub.f32 %v1364_v53, %v1383_v56  ;;  %v2073_v53 = vld [vmem:[#allocation10 + $0x10] sm:$0xf] }
 0x534   :  { %v2074_v37 = vor.u32 %v2226_v31, %v2073_v53 }
 0x535   :  { %v1391_v59 = vmul.f32 %v3068_v0, %v3068_v0 }
 0x536   :  { %1579 = vmatpush.bf16.msrb.mxu1 %v2074_v37 }
 0x537   :  { %1397 = vadd.xlane.f32.xlu2 %v1391_v59 }
 0x538   :  { %v1373_v63 = vpop.xlane.xlu2 %1372 }
 0x539   :  { %v1384_v3 = vmul.f32 %v3055_v19, %v1373_v63 }
 0x53a   :  { %1580 = vmatpush.bf16.msrb.mxu1 %v2066_v52 }
 0x53b   :  { %v3073_v39 = vsub.f32 %v1365_v36, %v1384_v3  ;;  %v2075_v36 = vld [vmem:[#allocation10 + $0x18] sm:$0xf0] }
 0x53c   :  { %v2078_v47 = vor.u32 %v2225_v40, %v2075_v36 }
 0x53d   :  { %v1392_v4 = vmul.f32 %v3073_v39, %v3073_v39 }
 0x53e   :  { %1598 = vmatpush.bf16.msra.mxu2 %v2078_v47 }
 0x53f   :  { %1399 = vadd.xlane.f32.xlu1 %v1392_v4 }
 0x542   :  { %1599 = vmatpush.bf16.msra.mxu2 %v2070_v49 }
 0x570   :  { %v1394_v7 = vpop.xlane.xlu1 %1393 }
 0x571   :  { %v1401_v13 = vmul.f32 %v1394_v7, %v3055_v19 }
 0x573   :  { %v1405_v10 = vadd.f32 1e-05, %v1401_v13 }
 0x575   :  { %2463 = vrsqrt.f32 %v1405_v10  ;;  %vm1415_vm6 = vweird.f32 %v1405_v10 }
 0x578   :  { %v1396_v1 = vpop.xlane.xlu0 %1395 }
 0x579   :  { %v1402_v55 = vmul.f32 %v1396_v1, %v3055_v19  ;;  %v2241_v1 = vld [vmem:[#allocation11 + $0x10] sm:$0xff] }
 0x57b   :  { %v2464_v51 = vpop.eup %2463  ;;  %v1406_v56 = vadd.f32 1e-05, %v1402_v55  ;;  %v2250_v55 = vld [vmem:[#allocation11 + $0x58] sm:$0xff] }
 0x57c   :  { %v1410_v59 = vmul.f32 %v2464_v51, %v1405_v10  ;;  %vm1416_vm5 = vweird.f32 %v2464_v51  ;;  %v2242_v10 = vld [vmem:[#allocation11 + $0x18] sm:$0xff] }
 0x57d   :  { %2465 = vrsqrt.f32 %v1406_v56  ;;  %vm1417_vm7 = vmor %vm1415_vm6, %vm1416_vm5  ;;  %vm1425_vm9 = vweird.f32 %v1406_v56 }
 0x57e   :  { %v1411_v63 = vmul.f32 %v2464_v51, %v1410_v59  ;;  %v2248_v59 = vld [vmem:[#allocation11 + $0x48] sm:$0xff] }
 0x580   :  { %v1412_v3 = vmul.f32 0.5, %v1411_v63  ;;  %v2247_v63 = vld [vmem:[#allocation11 + $0x40] sm:$0xff] }
 0x582   :  { %v1413_v4 = vsub.f32 1.5, %v1412_v3  ;;  %v1487_v3 = vld [vmem:[%s3151_s8] sm:$0x3] }
 0x583   :  { %v2466_v5 = vpop.eup %2465 }
 0x584   :  { %v1414_v32 = vmul.f32 %v2464_v51, %v1413_v4  ;;  %v1420_v6 = vmul.f32 %v2466_v5, %v1406_v56  ;;  %vm1426_vm8 = vweird.f32 %v2466_v5  ;;  %v2239_v56 = vld [vmem:[#allocation11] sm:$0xff] }
 0x585   :  { %vm1427_vm10 = vmor %vm1425_vm9, %vm1426_vm8 }
 0x586   :  { %v1421_v43 = vmul.f32 %v2466_v5, %v1420_v6  ;;  %v1418_v14 = vsel %vm1417_vm7, %v2464_v51, %v1414_v32  ;;  %v2249_v51 = vld [vmem:[#allocation11 + $0x50] sm:$0xff] }
 0x587   :  { %v1449_v12 = vmul.f32 %v1418_v14, %v3058_v16  ;;  %v1490_v14 = vperm.slane %v1487_v3, 1 }
 0x588   :  { %v1422_v20 = vmul.f32 0.5, %v1421_v43 }
 0x589   :  { %v1457_v21 = vmul.f32 %v2392_v17, %v1449_v12 }
 0x58a   :  { %v1423_v22 = vsub.f32 1.5, %v1422_v20 }
 0x58b   :  { %v3087_v41 = vadd.f32 %v2393_v25, %v1457_v21 }
 0x58c   :  { %v1424_v46 = vmul.f32 %v2466_v5, %v1423_v22 }
 0x58e   :  { %v1428_v18 = vsel %vm1427_vm10, %v2466_v5, %v1424_v46  ;;  %v1489_v5 = vperm.slane %v1487_v3, 0 }
 0x58f   :  { %v1450_v60 = vmul.f32 %v1428_v18, %v3063_v54  ;;  %v2246_v54 = vld [vmem:[#allocation11 + $0x38] sm:$0xff] }
 0x590   :  { %1755 = vmatpush.bf16.msrb.mxu3 %v2246_v54 }
 0x591   :  { %v1458_v27 = vmul.f32 %v2392_v17, %v1450_v60 }
 0x593   :  { %v3089_v28 = vadd.f32 %v2393_v25, %v1458_v27 }
 0x594   :  { %1756 = vmatpush.bf16.msrb.mxu3 %v2245_v11 }
 0x595   :  { %v1469_v16 = vpack.c.bf16 %v3089_v28, %v3087_v41 }
 0x597   :  { %1581 = vmatmul.bf16.vlgmr.msrb.gmra.mxu1 %v1469_v16  ;;  %1600 = vmatmul.bf16.vlgmr.msra.gmra.mxu2 %v1469_v16 }
 0x598   :  { %1757 = vmatpush.bf16.msrb.mxu3 %v2244_v48 }
 0x59c   :  { %1758 = vmatpush.bf16.msrb.mxu3 %v2243_v35 }
 0x5a0   :  { %1759 = vmatpush.bf16.msrb.mxu3 %v2242_v10 }
 0x5a4   :  { %1760 = vmatpush.bf16.msrb.mxu3 %v2241_v1 }
 0x5aa   :  { %v1398_v9 = vpop.xlane.xlu2 %1397 }
 0x5ab   :  { %v1403_v57 = vmul.f32 %v1398_v9, %v3055_v19 }
 0x5ad   :  { %v1407_v26 = vadd.f32 1e-05, %v1403_v57 }
 0x5af   :  { %2467 = vrsqrt.f32 %v1407_v26  ;;  %vm1435_vm12 = vweird.f32 %v1407_v26 }
 0x5b2   :  { %v1400_v8 = vpop.xlane.xlu1 %1399 }
 0x5b3   :  { %v1404_v38 = vmul.f32 %v1400_v8, %v3055_v19 }
 0x5b5   :  { %v2468_v33 = vpop.eup %2467  ;;  %v1408_v42 = vadd.f32 1e-05, %v1404_v38 }
 0x5b6   :  { %v1430_v62 = vmul.f32 %v2468_v33, %v1407_v26  ;;  %vm1436_vm11 = vweird.f32 %v2468_v33 }
 0x5b7   :  { %2469 = vrsqrt.f32 %v1408_v42  ;;  %vm1437_vm13 = vmor %vm1435_vm12, %vm1436_vm11  ;;  %vm1445_vm15 = vweird.f32 %v1408_v42 }
 0x5b8   :  { %v1431_v34 = vmul.f32 %v2468_v33, %v1430_v62 }
 0x5ba   :  { %v1432_v23 = vmul.f32 0.5, %v1431_v34 }
 0x5bc   :  { %v1433_v30 = vsub.f32 1.5, %v1432_v23 }
 0x5bd   :  { %v2470_v61 = vpop.eup %2469 }
 0x5be   :  { %v1434_v24 = vmul.f32 %v2468_v33, %v1433_v30  ;;  %v1440_v53 = vmul.f32 %v2470_v61, %v1408_v42  ;;  %vm1446_vm14 = vweird.f32 %v2470_v61 }
 0x5bf   :  { %vm1447_vm0 = vmor %vm1445_vm15, %vm1446_vm14 }
 0x5c0   :  { %v1441_v31 = vmul.f32 %v2470_v61, %v1440_v53  ;;  %v1438_v37 = vsel %vm1437_vm13, %v2468_v33, %v1434_v24 }
 0x5c1   :  { %v1451_v44 = vmul.f32 %v1438_v37, %v3068_v0  ;;  %v2251_v0 = vld [vmem:[#allocation11 + $0x60] sm:$0xff] }
 0x5c2   :  { %v1442_v40 = vmul.f32 0.5, %v1441_v31  ;;  %1777 = vmatpush.bf16.msra.mxu0 %v2251_v0 }
 0x5c3   :  { %v1459_v15 = vmul.f32 %v2392_v17, %v1451_v44 }
 0x5c4   :  { %v1443_v36 = vsub.f32 1.5, %v1442_v40 }
 0x5c5   :  { %v3097_v13 = vadd.f32 %v2393_v25, %v1459_v15 }
 0x5c6   :  { %v1444_v45 = vmul.f32 %v2470_v61, %v1443_v36  ;;  %1778 = vmatpush.bf16.msra.mxu0 %v2250_v55 }
 0x5c8   :  { %v1448_v7 = vsel %vm1447_vm0, %v2470_v61, %v1444_v45 }
 0x5c9   :  { %v1452_v47 = vmul.f32 %v1448_v7, %v3073_v39  ;;  %v2240_v39 = vld [vmem:[#allocation11 + $0x8] sm:$0xff] }
 0x5ca   :  { %1761 = vmatpush.bf16.msrb.mxu3 %v2240_v39  ;;  %1779 = vmatpush.bf16.msra.mxu0 %v2249_v51 }
 0x5cb   :  { %v1460_v50 = vmul.f32 %v2392_v17, %v1452_v47 }
 0x5cd   :  { %v3099_v52 = vadd.f32 %v2393_v25, %v1460_v50 }
 0x5ce   :  { %1762 = vmatpush.bf16.msrb.mxu3 %v2239_v56  ;;  %1780 = vmatpush.bf16.msra.mxu0 %v2248_v59 }
 0x5cf   :  { %v1470_v49 = vpack.c.bf16 %v3099_v52, %v3097_v13 }
 0x5d1   :  { %1586 = vmatmul.bf16.gmra.mxu1 %v1470_v49  ;;  %1605 = vmatmul.bf16.gmra.mxu2 %v1470_v49 }
 0x5d2   :  { %1781 = vmatpush.bf16.msra.mxu0 %v2247_v63 }
 0x614   :  { %v1582_v4 = vpop.f32.mrf.mxu1 }
 0x615   :  { %v1583_v6 = vadd.f32 %v1582_v4, %v1489_v5 }
 0x617   :  { %v1611_v22 = vmax.f32 %v1583_v6, 0.0 }
 0x61a   :  { %v1601_v32 = vpop.f32.mrf.mxu2 }
 0x61b   :  { %v1602_v17 = vadd.f32 %v1601_v32, %v1490_v14 }
 0x61c   :  { %v1584_v43 = vpop.f32.mrf.mxu1 }
 0x61d   :  { %v1585_v20 = vadd.f32 %v1584_v43, %v1489_v5  ;;  %v1612_v21 = vmax.f32 %v1602_v17, 0.0 }
 0x61f   :  { %v1613_v12 = vmax.f32 %v1585_v20, 0.0 }
 0x621   :  { %v1619_v46 = vpack.c.bf16 %v1613_v12, %v1611_v22 }
 0x622   :  { %v1603_v18 = vpop.f32.mrf.mxu2 }
 0x623   :  { %v1604_v60 = vadd.f32 %v1603_v18, %v1490_v14  ;;  %1763 = vmatmul.bf16.vlgmr.msrb.gmra.mxu3 %v1619_v46 }
 0x625   :  { %v1614_v25 = vmax.f32 %v1604_v60, 0.0 }
 0x627   :  { %v1620_v27 = vpack.c.bf16 %v1614_v25, %v1612_v21 }
 0x629   :  { %1782 = vmatmul.bf16.vlgmr.msra.gmra.mxu0 %v1620_v27 }
 0x64e   :  { %v1587_v16 = vpop.f32.mrf.mxu1 }
 0x64f   :  { %v1588_v57 = vadd.f32 %v1587_v16, %v1489_v5 }
 0x651   :  { %v1615_v29 = vmax.f32 %v1588_v57, 0.0  ;;  %v2395_v57 = vld [vmem:[%s3154_s11] ss:$0 sm:$0xff]  ;;  %s2676_s11 = smov [#allocation13]  }
 0x654   :  { %v1606_v9 = vpop.f32.mrf.mxu2 }
 0x655   :  { %v1607_v38 = vadd.f32 %v1606_v9, %v1490_v14 }
 0x656   :  { %v1589_v26 = vpop.f32.mrf.mxu1 }
 0x657   :  { %v1590_v54 = vadd.f32 %v1589_v26, %v1489_v5  ;;  %v1616_v42 = vmax.f32 %v1607_v38, 0.0 }
 0x659   :  { %v1617_v8 = vmax.f32 %v1590_v54, 0.0 }
 0x65b   :  { %v1621_v11 = vpack.c.bf16 %v1617_v8, %v1615_v29  ;;  %v2396_v8 = vld [vmem:[%s3155_s12] ss:$0 sm:$0xff]  ;;  %s1901_s12 = sshll.u32 %s2676_s11, 4  ;;  %s1902_s12 = int_to_ptr.vmem [resolvable:$true] %s1901_s12 }
 0x65c   :  { %v1608_v58 = vpop.f32.mrf.mxu2 }
 0x65d   :  { %v1609_v33 = vadd.f32 %v1608_v58, %v1490_v14  ;;  %1768 = vmatmul.bf16.gmra.mxu3 %v1621_v11 }
 0x65f   :  { %v1618_v62 = vmax.f32 %v1609_v33, 0.0 }
 0x661   :  { %v1622_v48 = vpack.c.bf16 %v1618_v62, %v1616_v42 }
 0x663   :  { %1787 = vmatmul.bf16.gmra.mxu0 %v1622_v48 }
 0x6a6   :  { %v1764_v34 = vpop.f32.mrf.mxu3  ;;  %v1783_v23 = vpop.f32.mrf.mxu0 }
 0x6a7   :  { %v1765_v35 = vadd.f32 %v2394_v2, %v1764_v34 }
 0x6a9   :  { %v1784_v30 = vadd.f32 %v1783_v23, %v1765_v35 }
 0x6ab   :  { %v1793_v61 = vadd.f32 %v1784_v30, %v3087_v41 }
 0x6ad   :  { %1797 = vadd.xlane.f32.xlu0 %v1793_v61 }
 0x6ae   :  { %v1766_v24 = vpop.f32.mrf.mxu3  ;;  %v1785_v31 = vpop.f32.mrf.mxu0 }
 0x6af   :  { %v1767_v53 = vadd.f32 %v2394_v2, %v1766_v24 }
 0x6b1   :  { %v1786_v40 = vadd.f32 %v1785_v31, %v1767_v53 }
 0x6b3   :  { %v1794_v37 = vadd.f32 %v1786_v40, %v3089_v28 }
 0x6b5   :  { %1799 = vadd.xlane.f32.xlu2 %v1794_v37 }
 0x6e0   :  { %v1769_v36 = vpop.f32.mrf.mxu3  ;;  %v1788_v44 = vpop.f32.mrf.mxu0 }
 0x6e1   :  { %v1770_v45 = vadd.f32 %v2394_v2, %v1769_v36 }
 0x6e3   :  { %v1789_v7 = vadd.f32 %v1788_v44, %v1770_v45 }
 0x6e5   :  { %v1795_v47 = vadd.f32 %v1789_v7, %v3097_v13 }
 0x6e7   :  { %1801 = vadd.xlane.f32.xlu1 %v1795_v47 }
 0x6e8   :  { %v1771_v15 = vpop.f32.mrf.mxu3  ;;  %v1790_v49 = vpop.f32.mrf.mxu0 }
 0x6e9   :  { %v1772_v50 = vadd.f32 %v2394_v2, %v1771_v15 }
 0x6eb   :  { %v1791_v10 = vadd.f32 %v1790_v49, %v1772_v50 }
 0x6ed   :  { %v1796_v41 = vadd.f32 %v1791_v10, %v3099_v52 }
 0x6ef   :  { %1803 = vadd.xlane.f32.xlu0 %v1796_v41 }
 0x720   :  { %v1798_v0 = vpop.xlane.xlu0 %1797 }
 0x721   :  { %v1805_v1 = vmul.f32 %v1798_v0, %v3055_v19 }
 0x723   :  { %v1809_v55 = vsub.f32 %v1793_v61, %v1805_v1 }
 0x725   :  { %v1813_v28 = vmul.f32 %v1809_v55, %v1809_v55 }
 0x727   :  { %1817 = vadd.xlane.f32.xlu2 %v1813_v28 }
 0x728   :  { %v1800_v39 = vpop.xlane.xlu2 %1799 }
 0x729   :  { %v1806_v51 = vmul.f32 %v1800_v39, %v3055_v19 }
 0x72b   :  { %v1810_v56 = vsub.f32 %v1794_v37, %v1806_v51 }
 0x72d   :  { %v1814_v59 = vmul.f32 %v1810_v56, %v1810_v56 }
 0x72f   :  { %1819 = vadd.xlane.f32.xlu1 %v1814_v59 }
 0x75a   :  { %v1802_v13 = vpop.xlane.xlu1 %1801 }
 0x75b   :  { %v1807_v63 = vmul.f32 %v1802_v13, %v3055_v19 }
 0x75d   :  { %v3116_v3 = vsub.f32 %v1795_v47, %v1807_v63 }
 0x75f   :  { %v1815_v52 = vmul.f32 %v3116_v3, %v3116_v3 }
 0x761   :  { %1821 = vadd.xlane.f32.xlu0 %v1815_v52 }
 0x762   :  { %v1804_v4 = vpop.xlane.xlu0 %1803 }
 0x763   :  { %v1808_v5 = vmul.f32 %v1804_v4, %v3055_v19 }
 0x765   :  { %v3121_v32 = vsub.f32 %v1796_v41, %v1808_v5 }
 0x767   :  { %v1816_v6 = vmul.f32 %v3121_v32, %v3121_v32 }
 0x769   :  { %1823 = vadd.xlane.f32.xlu2 %v1816_v6 }
 0x79a   :  { %v1818_v43 = vpop.xlane.xlu2 %1817 }
 0x79b   :  { %v1825_v14 = vmul.f32 %v1818_v43, %v3055_v19 }
 0x79d   :  { %v1829_v20 = vadd.f32 1e-05, %v1825_v14 }
 0x79f   :  { %2471 = vrsqrt.f32 %v1829_v20  ;;  %vm1839_vm2 = vweird.f32 %v1829_v20 }
 0x7a2   :  { %v1820_v22 = vpop.xlane.xlu1 %1819 }
 0x7a3   :  { %v1826_v12 = vmul.f32 %v1820_v22, %v3055_v19 }
 0x7a5   :  { %v2472_v17 = vpop.eup %2471  ;;  %v1830_v46 = vadd.f32 1e-05, %v1826_v12 }
 0x7a6   :  { %v1834_v18 = vmul.f32 %v2472_v17, %v1829_v20  ;;  %vm1840_vm1 = vweird.f32 %v2472_v17 }
 0x7a7   :  { %2473 = vrsqrt.f32 %v1830_v46  ;;  %vm1841_vm3 = vmor %vm1839_vm2, %vm1840_vm1  ;;  %vm1849_vm5 = vweird.f32 %v1830_v46 }
 0x7a8   :  { %v1835_v60 = vmul.f32 %v2472_v17, %v1834_v18 }
 0x7aa   :  { %v1836_v21 = vmul.f32 0.5, %v1835_v60 }
 0x7ac   :  { %v1837_v25 = vsub.f32 1.5, %v1836_v21 }
 0x7ad   :  { %v2474_v27 = vpop.eup %2473 }
 0x7ae   :  { %v1838_v16 = vmul.f32 %v2472_v17, %v1837_v25  ;;  %v1844_v9 = vmul.f32 %v2474_v27, %v1830_v46  ;;  %vm1850_vm4 = vweird.f32 %v2474_v27 }
 0x7af   :  { %vm1851_vm6 = vmor %vm1849_vm5, %vm1850_vm4 }
 0x7b0   :  { %v1842_v26 = vsel %vm1841_vm3, %v2472_v17, %v1838_v16  ;;  %v1845_v54 = vmul.f32 %v2474_v27, %v1844_v9 }
 0x7b1   :  { %v1873_v29 = vmul.f32 %v1842_v26, %v1809_v55 }
 0x7b2   :  { %v1846_v38 = vmul.f32 0.5, %v1845_v54 }
 0x7b3   :  { %v1881_v11 = vmul.f32 %v2395_v57, %v1873_v29 }
 0x7b4   :  { %v1847_v58 = vsub.f32 1.5, %v1846_v38 }
 0x7b5   :  { %v1889_v33 = vadd.f32 %v2396_v8, %v1881_v11 }
 0x7b6   :  { %v1848_v42 = vmul.f32 %v2474_v27, %v1847_v58 }
 0x7b7   :  { %1893 = vst [vmem:[#allocation13] sm:$0xff] %v1889_v33 }
 0x7b8   :  { %v1852_v62 = vsel %vm1851_vm6, %v2474_v27, %v1848_v42 }
 0x7b9   :  { %v1874_v48 = vmul.f32 %v1852_v62, %v1810_v56 }
 0x7bb   :  { %v1882_v2 = vmul.f32 %v2395_v57, %v1874_v48 }
 0x7bd   :  { %v1890_v34 = vadd.f32 %v2396_v8, %v1882_v2 }
 0x7bf   :  { %1894 = vst [vmem:[#allocation13 + $0x8] sm:$0xff] %v1890_v34 }
 0x7d4   :  { %v1822_v23 = vpop.xlane.xlu0 %1821 }
 0x7d5   :  { %v1827_v35 = vmul.f32 %v1822_v23, %v3055_v19 }
 0x7d7   :  { %v1831_v30 = vadd.f32 1e-05, %v1827_v35 }
 0x7d9   :  { %2475 = vrsqrt.f32 %v1831_v30  ;;  %vm1859_vm8 = vweird.f32 %v1831_v30 }
 0x7dc   :  { %v1824_v61 = vpop.xlane.xlu2 %1823 }
 0x7dd   :  { %v1828_v24 = vmul.f32 %v1824_v61, %v3055_v19 }
 0x7df   :  { %v2476_v53 = vpop.eup %2475  ;;  %v1832_v31 = vadd.f32 1e-05, %v1828_v24 }
 0x7e0   :  { %v1854_v40 = vmul.f32 %v2476_v53, %v1831_v30  ;;  %vm1860_vm7 = vweird.f32 %v2476_v53 }
 0x7e1   :  { %2477 = vrsqrt.f32 %v1832_v31  ;;  %vm1861_vm9 = vmor %vm1859_vm8, %vm1860_vm7  ;;  %vm1869_vm11 = vweird.f32 %v1832_v31 }
 0x7e2   :  { %v1855_v37 = vmul.f32 %v2476_v53, %v1854_v40 }
 0x7e4   :  { %v1856_v36 = vmul.f32 0.5, %v1855_v37 }
 0x7e6   :  { %v1857_v44 = vsub.f32 1.5, %v1856_v36 }
 0x7e7   :  { %v2478_v45 = vpop.eup %2477 }
 0x7e8   :  { %v1858_v7 = vmul.f32 %v2476_v53, %v1857_v44  ;;  %v1864_v47 = vmul.f32 %v2478_v45, %v1832_v31  ;;  %vm1870_vm10 = vweird.f32 %v2478_v45 }
 0x7e9   :  { %vm1871_vm12 = vmor %vm1869_vm11, %vm1870_vm10 }
 0x7ea   :  { %v1862_v15 = vsel %vm1861_vm9, %v2476_v53, %v1858_v7  ;;  %v1865_v50 = vmul.f32 %v2478_v45, %v1864_v47 }
 0x7eb   :  { %v1875_v49 = vmul.f32 %v1862_v15, %v3116_v3 }
 0x7ec   :  { %v1866_v10 = vmul.f32 0.5, %v1865_v50 }
 0x7ed   :  { %v1883_v41 = vmul.f32 %v2395_v57, %v1875_v49 }
 0x7ee   :  { %v1867_v19 = vsub.f32 1.5, %v1866_v10 }
 0x7ef   :  { %v1891_v0 = vadd.f32 %v2396_v8, %v1883_v41 }
 0x7f0   :  { %v1868_v1 = vmul.f32 %v2478_v45, %v1867_v19 }
 0x7f1   :  { %1895 = vst [vmem:[#allocation13 + $0x10] sm:$0xff] %v1891_v0 }
 0x7f2   :  { %v1872_v55 = vsel %vm1871_vm12, %v2478_v45, %v1868_v1 }
 0x7f3   :  { %v1876_v28 = vmul.f32 %v1872_v55, %v3121_v32 }
 0x7f5   :  { %v1884_v39 = vmul.f32 %v2395_v57, %v1876_v28 }
 0x7f7   :  { %v1892_v51 = vadd.f32 %v2396_v8, %v1884_v39 }
 0x7f9   :  { %1896 = vst [vmem:[#allocation13 + $0x18] sm:$0xff] %v1892_v51 }
 0x7fa   :  { %1909 = dma.vmem_to_hbm [thread:$0]  %s1902_s12, 512, %s1904_s0, [#allocation4], %s2668_s28, %s2668_s28, %s2669_s29  }
 0x7fb   :  { %2659 = dma.done.wait [#allocation4], 512  }
 0x7fc   :  { %2660 = vsyncadd [#allocation4], 4294966784 }
 0x7fd   :  { %1914 = vsyncpa [#allocation3], 1 }
 0x7fe   :  { %1915 = vsyncpa [#allocation6], 1 }
 0x7ff   :  { %1916 = vsyncpa [#allocation9], 1 }
 0x800   :  { %1917 = vsyncpa [#allocation12], 1 }
 0x801   :  { %1918 = vsyncpa [#allocation4], 1 }

</bundles_post_ra>
